<compile_context>
chip_gen: v5e
topology: v5e:2x2
jax: 0.10.0
libtpu: 0.0.40
codegen_flags: <defaults>
</compile_context>

<pallas_src>
import jax
import jax.numpy as jnp
from jax.experimental import pallas as pl
from jax.experimental.pallas import tpu as pltpu

EPS = 1e-5  # torch.nn.LayerNorm default


# ------------------------------ fused kernel -------------------------------

def _block_kernel(v_ref, k_ref, q_ref, mask_ref,
                  wv_ref, wk_ref, wq_ref, wo_ref, bo_ref, hm_ref,
                  ln1g_ref, ln1b_ref, w1_ref, b1_ref, w2_ref, b2_ref,
                  ln2g_ref, ln2b_ref, o_ref):
    f32, bf16 = jnp.float32, jnp.bfloat16
    H, E = hm_ref.shape
    Lq = q_ref.shape[1]
    Lk = k_ref.shape[1]
    inv_scale = 1.0 / (float(E) ** 0.5)

    def mm(a, b):                 # (M, K) @ (K, N); bf16 in, f32 accumulate
        return jnp.dot(a.astype(bf16), b.astype(bf16),
                       preferred_element_type=f32)

    def mm_t(a, b):               # (M, K) @ (N, K)^T without materializing B.T
        return jax.lax.dot_general(
            a.astype(bf16), b.astype(bf16),
            dimension_numbers=(((1,), (1,)), ((), ())),
            preferred_element_type=f32)

    def layernorm(x, g, b):       # f32 math over the lane (embed) axis
        mu = jnp.mean(x, axis=-1, keepdims=True)
        var = jnp.mean(jnp.square(x - mu), axis=-1, keepdims=True)
        return (x - mu) * jax.lax.rsqrt(var + EPS) * g + b

    q_res = q_ref[0]                                   # (Lq, E) f32 residual
    hm = hm_ref[...]                                   # (H, E) head-column mask

    # ---- SelfAttention: head-batched projections (block-diagonal weights) ----
    qp = mm(q_res,    wq_ref[...])                     # (Lq, E)
    kp = mm(k_ref[0], wk_ref[...])                     # (Lk, E)
    vp = mm(v_ref[0], wv_ref[...])                     # (Lk, E)

    # Per-head scores in one GEMM: head-mask a broadcast of Q so each (Lq, E)
    # slab only "sees" its own head's Dh columns, then contract against K.
    qh = (qp[None, :, :] * hm[:, None, :]).reshape(H * Lq, E)
    energy = mm_t(qh, kp).reshape(H, Lq, Lk)           # (H, Lq, Lk) f32

    # masked_fill BEFORE the sqrt(embed_size) scale, exactly as the reference
    energy = jnp.where(mask_ref[...] < 0.5, -1e20, energy)
    energy = energy * inv_scale
    energy = energy - jnp.max(energy, axis=-1, keepdims=True)
    p = jnp.exp(energy)
    attn = p * pl.reciprocal(jnp.sum(p, axis=-1, keepdims=True), approx=True)

    # attention @ V for all heads in one GEMM, then head-mask + reduce over heads
    pv = mm(attn.reshape(H * Lq, Lk), vp)              # (H*Lq, E) f32
    ctx = jnp.sum(pv.reshape(H, Lq, E) * hm[:, None, :], axis=0)   # (Lq, E)

    attn_out = mm(ctx, wo_ref[...]) + bo_ref[...]      # fc_out

    # ---- residual + LayerNorm 1 (dropout = identity) ----
    x = layernorm(attn_out + q_res, ln1g_ref[...], ln1b_ref[...])

    # ---- feed-forward ----
    h1 = jnp.maximum(mm(x, w1_ref[...]) + b1_ref[...], 0.0)   # (Lq, F)
    h2 = mm(h1, w2_ref[...]) + b2_ref[...]                    # (Lq, E)

    # ---- residual + LayerNorm 2 (dropout = identity) ----
    o_ref[0] = layernorm(h2 + x, ln2g_ref[...], ln2b_ref[...])


def transformer_block(params, value, key_, query, mask):
    """TransformerBlock.forward(value, key, query, mask) as one fused Pallas kernel."""
    N, Lq, E = query.shape
    Lk = key_.shape[1]
    assert value.shape[1] == Lk, "reference einsum requires key_len == value_len"
    H = params["head_mask"].shape[0]
    F = params["w1"].shape[1]

    def rep(shape):  # replicated (grid-constant) operand
        nd = len(shape)
        return pl.BlockSpec(shape, lambda n, _nd=nd: (0,) * _nd)

    return pl.pallas_call(
        _block_kernel,
        out_shape=jax.ShapeDtypeStruct((N, Lq, E), jnp.float32),
        grid=(N,),
        in_specs=[
            pl.BlockSpec((1, Lk, E), lambda n: (n, 0, 0)),    # value
            pl.BlockSpec((1, Lk, E), lambda n: (n, 0, 0)),    # key
            pl.BlockSpec((1, Lq, E), lambda n: (n, 0, 0)),    # query
            pl.BlockSpec((1, Lq, Lk), lambda n: (n, 0, 0)),   # mask
            rep((E, E)), rep((E, E)), rep((E, E)),            # wv_bd, wk_bd, wq_bd
            rep((E, E)), rep((1, E)),                         # wo, bo
            rep((H, E)),                                      # head mask
            rep((1, E)), rep((1, E)),                         # ln1 gamma, beta
            rep((E, F)), rep((1, F)),                         # w1, b1
            rep((F, E)), rep((1, E)),                         # w2, b2
            rep((1, E)), rep((1, E)),                         # ln2 gamma, beta
        ],
        out_specs=pl.BlockSpec((1, Lq, E), lambda n: (n, 0, 0)),
        compiler_params=pltpu.CompilerParams(
            dimension_semantics=("parallel",)),
    )(value, key_, query, mask.astype(jnp.float32),
      params["wv_bd"], params["wk_bd"], params["wq_bd"],
      params["wo"], params["bo"].reshape(1, E),
      params["head_mask"],
      params["ln1_g"].reshape(1, E), params["ln1_b"].reshape(1, E),
      params["w1"], params["b1"].reshape(1, F),
      params["w2"], params["b2"].reshape(1, E),
      params["ln2_g"].reshape(1, E), params["ln2_b"].reshape(1, E))


# ------------------------------- parameters --------------------------------

def init_params(key, embed_size, heads, forward_expansion):
    E, H = embed_size, heads
    Dh = E // H
    assert Dh * H == E
    F = forward_expansion * E
    s = 0.1
    ks = jax.random.split(key, 9)
    nrm = lambda k, shape: s * jax.random.normal(k, shape, jnp.float32)

    eye = jnp.eye(H, dtype=jnp.float32)
    # per-head (Dh, Dh) Linear (bias=False) weights, stored (in, out), expanded to
    # block-diagonal (E, E) so the in-kernel projection is one MXU-aligned GEMM.
    blockdiag = lambda w: jnp.kron(eye, w).astype(jnp.bfloat16)

    return dict(
        wv_bd=blockdiag(nrm(ks[0], (Dh, Dh))),
        wk_bd=blockdiag(nrm(ks[1], (Dh, Dh))),
        wq_bd=blockdiag(nrm(ks[2], (Dh, Dh))),
        wo=nrm(ks[3], (E, E)).astype(jnp.bfloat16),
        bo=nrm(ks[4], (E,)),
        head_mask=jnp.repeat(eye, Dh, axis=1),                 # (H, E) 0/1
        ln1_g=jnp.ones((E,), jnp.float32), ln1_b=jnp.zeros((E,), jnp.float32),
        w1=nrm(ks[5], (E, F)).astype(jnp.bfloat16), b1=nrm(ks[6], (F,)),
        w2=nrm(ks[7], (F, E)).astype(jnp.bfloat16), b2=nrm(ks[8], (E,)),
        ln2_g=jnp.ones((E,), jnp.float32), ln2_b=jnp.zeros((E,), jnp.float32),
    )


# --------------------------- pure-JAX reference -----------------------------

def reference_block(p, value, key_, query, mask):
    N, Lq, E = query.shape
    H = p["head_mask"].shape[0]
    Dh = E // H
    f32 = jnp.float32
    vp = value @ p["wv_bd"].astype(f32)
    kp = key_ @ p["wk_bd"].astype(f32)
    qp = query @ p["wq_bd"].astype(f32)
    split = lambda x: x.reshape(N, -1, H, Dh)
    energy = jnp.einsum('nqhd,nkhd->nhqk', split(qp), split(kp))
    energy = jnp.where(mask[:, None] == 0.0, -1e20, energy)
    attn = jax.nn.softmax(energy / (E ** 0.5), axis=3)
    out = jnp.einsum('nhql,nlhd->nqhd', attn, split(vp)).reshape(N, Lq, E)
    out = out @ p["wo"].astype(f32) + p["bo"]

    def ln(x, g, b):
        mu = x.mean(-1, keepdims=True)
        var = ((x - mu) ** 2).mean(-1, keepdims=True)
        return (x - mu) / jnp.sqrt(var + EPS) * g + b

    x = ln(out + query, p["ln1_g"], p["ln1_b"])
    h = jnp.maximum(x @ p["w1"].astype(f32) + p["b1"], 0.0)
    h = h @ p["w2"].astype(f32) + p["b2"]
    return ln(h + x, p["ln2_g"], p["ln2_b"])


# ---------------------------------- main ------------------------------------

if __name__ == "__main__":
    cfg = dict(embed_size=128, heads=4, forward_expansion=4)
    N, L = 2, 8

    key = jax.random.PRNGKey(0)
    kp, kv, kk, kq = jax.random.split(key, 4)
    params = init_params(kp, **cfg)

    E = cfg["embed_size"]
    value = jax.random.normal(kv, (N, L, E), jnp.float32)
    key_ = jax.random.normal(kk, (N, L, E), jnp.float32)
    query = jax.random.normal(kq, (N, L, E), jnp.float32)
    # padding-style attention mask (last two key positions masked out)
    mask = jnp.ones((N, L, L), jnp.float32).at[:, :, -2:].set(0.0)

    fwd = jax.jit(transformer_block)
    out = jax.block_until_ready(fwd(params, value, key_, query, mask))

    assert out.shape == (N, L, E), out.shape
    assert bool(jnp.all(jnp.isfinite(out)))

    ref = reference_block(params, value, key_, query, mask)
    max_err = jnp.max(jnp.abs(out - ref))
    assert bool(max_err < 0.1), float(max_err)   # bf16-MXU vs f32 reference tolerance

    print("KERNEL_OK")
</pallas_src>

<mosaic_0001>
module attributes {stable_mosaic.version = 11 : i64} {
  func.func @_block_kernel(%arg0: i32, %arg1: memref<1x8x128xf32, #tpu.memory_space<vmem>>, %arg2: memref<1x8x128xf32, #tpu.memory_space<vmem>>, %arg3: memref<1x8x128xf32, #tpu.memory_space<vmem>>, %arg4: memref<1x8x8xf32, #tpu.memory_space<vmem>>, %arg5: memref<128x128xbf16, #tpu.memory_space<vmem>>, %arg6: memref<128x128xbf16, #tpu.memory_space<vmem>>, %arg7: memref<128x128xbf16, #tpu.memory_space<vmem>>, %arg8: memref<128x128xbf16, #tpu.memory_space<vmem>>, %arg9: memref<1x128xf32, #tpu.memory_space<vmem>>, %arg10: memref<4x128xf32, #tpu.memory_space<vmem>>, %arg11: memref<1x128xf32, #tpu.memory_space<vmem>>, %arg12: memref<1x128xf32, #tpu.memory_space<vmem>>, %arg13: memref<128x512xbf16, #tpu.memory_space<vmem>>, %arg14: memref<1x512xf32, #tpu.memory_space<vmem>>, %arg15: memref<512x128xbf16, #tpu.memory_space<vmem>>, %arg16: memref<1x128xf32, #tpu.memory_space<vmem>>, %arg17: memref<1x128xf32, #tpu.memory_space<vmem>>, %arg18: memref<1x128xf32, #tpu.memory_space<vmem>>, %arg19: memref<1x8x128xf32, #tpu.memory_space<vmem>>) attributes {dimension_semantics = [#tpu.dimension_semantics<parallel>], iteration_bounds = array<i64: 2>, scalar_prefetch = 0 : i64, scratch_operands = 0 : i64, tpu.core_type = #tpu.core_type<tc>, window_params = [{transform_indices = @transform_0, window_bounds = array<i64: 1, 8, 128>}, {transform_indices = @transform_1, window_bounds = array<i64: 1, 8, 128>}, {transform_indices = @transform_2, window_bounds = array<i64: 1, 8, 128>}, {transform_indices = @transform_3, window_bounds = array<i64: 1, 8, 8>}, {pipeline_mode = #tpu.pipeline_mode<synchronous>, transform_indices = @transform_4, window_bounds = array<i64: 128, 128>}, {pipeline_mode = #tpu.pipeline_mode<synchronous>, transform_indices = @transform_5, window_bounds = array<i64: 128, 128>}, {pipeline_mode = #tpu.pipeline_mode<synchronous>, transform_indices = @transform_6, window_bounds = array<i64: 128, 128>}, {pipeline_mode = #tpu.pipeline_mode<synchronous>, transform_indices = @transform_7, window_bounds = array<i64: 128, 128>}, {pipeline_mode = #tpu.pipeline_mode<synchronous>, transform_indices = @transform_8, window_bounds = array<i64: 1, 128>}, {pipeline_mode = #tpu.pipeline_mode<synchronous>, transform_indices = @transform_9, window_bounds = array<i64: 4, 128>}, {pipeline_mode = #tpu.pipeline_mode<synchronous>, transform_indices = @transform_10, window_bounds = array<i64: 1, 128>}, {pipeline_mode = #tpu.pipeline_mode<synchronous>, transform_indices = @transform_11, window_bounds = array<i64: 1, 128>}, {pipeline_mode = #tpu.pipeline_mode<synchronous>, transform_indices = @transform_12, window_bounds = array<i64: 128, 512>}, {pipeline_mode = #tpu.pipeline_mode<synchronous>, transform_indices = @transform_13, window_bounds = array<i64: 1, 512>}, {pipeline_mode = #tpu.pipeline_mode<synchronous>, transform_indices = @transform_14, window_bounds = array<i64: 512, 128>}, {pipeline_mode = #tpu.pipeline_mode<synchronous>, transform_indices = @transform_15, window_bounds = array<i64: 1, 128>}, {pipeline_mode = #tpu.pipeline_mode<synchronous>, transform_indices = @transform_16, window_bounds = array<i64: 1, 128>}, {pipeline_mode = #tpu.pipeline_mode<synchronous>, transform_indices = @transform_17, window_bounds = array<i64: 1, 128>}, {transform_indices = @transform_18, window_bounds = array<i64: 1, 8, 128>}]} {
    %c0 = arith.constant 0 : index
    %c0_0 = arith.constant 0 : index
    %c0_1 = arith.constant 0 : index
    %0 = vector.load %arg3[%c0, %c0_0, %c0_1] : memref<1x8x128xf32, #tpu.memory_space<vmem>>, vector<1x8x128xf32>
    %1 = vector.shape_cast %0 : vector<1x8x128xf32> to vector<8x128xf32>
    %c0_2 = arith.constant 0 : index
    %c0_3 = arith.constant 0 : index
    %2 = vector.load %arg10[%c0_2, %c0_3] : memref<4x128xf32, #tpu.memory_space<vmem>>, vector<4x128xf32>
    %c0_4 = arith.constant 0 : index
    %c0_5 = arith.constant 0 : index
    %3 = vector.load %arg7[%c0_4, %c0_5] : memref<128x128xbf16, #tpu.memory_space<vmem>>, vector<128x128xbf16>
    %4 = arith.truncf %1 : vector<8x128xf32> to vector<8x128xbf16>
    %cst = arith.constant dense<0.000000e+00> : vector<8x128xf32>
    %5 = tpu.matmul %4, %3, %cst {dimension_numbers = #tpu.dot_dimension_numbers<[1], [0], [0], [1], [0, 0, 1, 1], [], []>} : vector<8x128xbf16>, vector<128x128xbf16>, vector<8x128xf32> -> vector<8x128xf32>
    %c0_6 = arith.constant 0 : index
    %c0_7 = arith.constant 0 : index
    %c0_8 = arith.constant 0 : index
    %6 = vector.load %arg2[%c0_6, %c0_7, %c0_8] : memref<1x8x128xf32, #tpu.memory_space<vmem>>, vector<1x8x128xf32>
    %7 = vector.shape_cast %6 : vector<1x8x128xf32> to vector<8x128xf32>
    %c0_9 = arith.constant 0 : index
    %c0_10 = arith.constant 0 : index
    %8 = vector.load %arg6[%c0_9, %c0_10] : memref<128x128xbf16, #tpu.memory_space<vmem>>, vector<128x128xbf16>
    %9 = arith.truncf %7 : vector<8x128xf32> to vector<8x128xbf16>
    %cst_11 = arith.constant dense<0.000000e+00> : vector<8x128xf32>
    %10 = tpu.matmul %9, %8, %cst_11 {dimension_numbers = #tpu.dot_dimension_numbers<[1], [0], [0], [1], [0, 0, 1, 1], [], []>} : vector<8x128xbf16>, vector<128x128xbf16>, vector<8x128xf32> -> vector<8x128xf32>
    %c0_12 = arith.constant 0 : index
    %c0_13 = arith.constant 0 : index
    %c0_14 = arith.constant 0 : index
    %11 = vector.load %arg1[%c0_12, %c0_13, %c0_14] : memref<1x8x128xf32, #tpu.memory_space<vmem>>, vector<1x8x128xf32>
    %12 = vector.shape_cast %11 : vector<1x8x128xf32> to vector<8x128xf32>
    %c0_15 = arith.constant 0 : index
    %c0_16 = arith.constant 0 : index
    %13 = vector.load %arg5[%c0_15, %c0_16] : memref<128x128xbf16, #tpu.memory_space<vmem>>, vector<128x128xbf16>
    %14 = arith.truncf %12 : vector<8x128xf32> to vector<8x128xbf16>
    %cst_17 = arith.constant dense<0.000000e+00> : vector<8x128xf32>
    %15 = tpu.matmul %14, %13, %cst_17 {dimension_numbers = #tpu.dot_dimension_numbers<[1], [0], [0], [1], [0, 0, 1, 1], [], []>} : vector<8x128xbf16>, vector<128x128xbf16>, vector<8x128xf32> -> vector<8x128xf32>
    %16 = vector.shape_cast %5 : vector<8x128xf32> to vector<1x8x128xf32>
    %17 = vector.shape_cast %2 : vector<4x128xf32> to vector<4x1x128xf32>
    %18 = vector.broadcast %16 : vector<1x8x128xf32> to vector<4x8x128xf32>
    %19 = vector.broadcast %17 : vector<4x1x128xf32> to vector<4x8x128xf32>
    %20 = arith.mulf %18, %19 : vector<4x8x128xf32>
    %21 = vector.shape_cast %20 : vector<4x8x128xf32> to vector<32x128xf32>
    %22 = arith.truncf %21 : vector<32x128xf32> to vector<32x128xbf16>
    %23 = arith.truncf %10 : vector<8x128xf32> to vector<8x128xbf16>
    %cst_18 = arith.constant dense<0.000000e+00> : vector<32x8xf32>
    %24 = tpu.matmul %22, %23, %cst_18 {dimension_numbers = #tpu.dot_dimension_numbers<[1], [1], [0], [0], [0, 0, 1, 0], [], []>} : vector<32x128xbf16>, vector<8x128xbf16>, vector<32x8xf32> -> vector<32x8xf32>
    %25 = vector.shape_cast %24 : vector<32x8xf32> to vector<4x8x8xf32>
    %c0_19 = arith.constant 0 : index
    %c0_20 = arith.constant 0 : index
    %c0_21 = arith.constant 0 : index
    %26 = vector.load %arg4[%c0_19, %c0_20, %c0_21] : memref<1x8x8xf32, #tpu.memory_space<vmem>>, vector<1x8x8xf32>
    %cst_22 = arith.constant 5.000000e-01 : f32
    %27 = vector.broadcast %cst_22 : f32 to vector<1x8x8xf32>
    %28 = arith.cmpf olt, %26, %27 : vector<1x8x8xf32>
    %cst_23 = arith.constant -1.000000e+20 : f32
    %29 = vector.shape_cast %28 : vector<1x8x8xi1> to vector<1x8x8xi1>
    %30 = vector.broadcast %29 : vector<1x8x8xi1> to vector<4x8x8xi1>
    %31 = vector.broadcast %cst_23 : f32 to vector<4x8x8xf32>
    %32 = arith.select %30, %31, %25 : vector<4x8x8xi1>, vector<4x8x8xf32>
    %cst_24 = arith.constant 0.0883883461 : f32
    %33 = vector.broadcast %cst_24 : f32 to vector<4x8x8xf32>
    %34 = arith.mulf %32, %33 : vector<4x8x8xf32>
    %cst_25 = arith.constant dense<0xFF800000> : vector<4x8xf32>
    %35 = vector.multi_reduction <maximumf>, %34, %cst_25 [2] : vector<4x8x8xf32> to vector<4x8xf32>
    %36 = vector.shape_cast %35 : vector<4x8xf32> to vector<4x8x1xf32>
    %37 = vector.broadcast %36 : vector<4x8x1xf32> to vector<4x8x8xf32>
    %38 = arith.subf %34, %37 : vector<4x8x8xf32>
    %39 = math.exp %38 : vector<4x8x8xf32>
    %cst_26 = arith.constant dense<0.000000e+00> : vector<4x8xf32>
    %40 = vector.multi_reduction <add>, %39, %cst_26 [2] : vector<4x8x8xf32> to vector<4x8xf32>
    %41 = vector.shape_cast %40 : vector<4x8xf32> to vector<4x8x1xf32>
    %42 = tpu.reciprocal %41 {approx = true} : vector<4x8x1xf32> -> vector<4x8x1xf32>
    %43 = vector.broadcast %42 : vector<4x8x1xf32> to vector<4x8x8xf32>
    %44 = arith.mulf %39, %43 : vector<4x8x8xf32>
    %45 = vector.shape_cast %44 : vector<4x8x8xf32> to vector<32x8xf32>
    %46 = arith.truncf %45 : vector<32x8xf32> to vector<32x8xbf16>
    %47 = arith.truncf %15 : vector<8x128xf32> to vector<8x128xbf16>
    %cst_27 = arith.constant dense<0.000000e+00> : vector<32x128xf32>
    %48 = tpu.matmul %46, %47, %cst_27 {dimension_numbers = #tpu.dot_dimension_numbers<[1], [0], [0], [1], [0, 0, 1, 1], [], []>} : vector<32x8xbf16>, vector<8x128xbf16>, vector<32x128xf32> -> vector<32x128xf32>
    %49 = vector.shape_cast %48 : vector<32x128xf32> to vector<4x8x128xf32>
    %50 = vector.shape_cast %2 : vector<4x128xf32> to vector<4x1x128xf32>
    %51 = vector.broadcast %50 : vector<4x1x128xf32> to vector<4x8x128xf32>
    %52 = arith.mulf %49, %51 : vector<4x8x128xf32>
    %cst_28 = arith.constant dense<0.000000e+00> : vector<8x128xf32>
    %53 = vector.multi_reduction <add>, %52, %cst_28 [0] : vector<4x8x128xf32> to vector<8x128xf32>
    %c0_29 = arith.constant 0 : index
    %c0_30 = arith.constant 0 : index
    %54 = vector.load %arg8[%c0_29, %c0_30] : memref<128x128xbf16, #tpu.memory_space<vmem>>, vector<128x128xbf16>
    %55 = arith.truncf %53 : vector<8x128xf32> to vector<8x128xbf16>
    %cst_31 = arith.constant dense<0.000000e+00> : vector<8x128xf32>
    %56 = tpu.matmul %55, %54, %cst_31 {dimension_numbers = #tpu.dot_dimension_numbers<[1], [0], [0], [1], [0, 0, 1, 1], [], []>} : vector<8x128xbf16>, vector<128x128xbf16>, vector<8x128xf32> -> vector<8x128xf32>
    %c0_32 = arith.constant 0 : index
    %c0_33 = arith.constant 0 : index
    %57 = vector.load %arg9[%c0_32, %c0_33] : memref<1x128xf32, #tpu.memory_space<vmem>>, vector<1x128xf32>
    %58 = vector.broadcast %57 : vector<1x128xf32> to vector<8x128xf32>
    %59 = arith.addf %56, %58 : vector<8x128xf32>
    %60 = arith.addf %59, %1 : vector<8x128xf32>
    %c0_34 = arith.constant 0 : index
    %c0_35 = arith.constant 0 : index
    %61 = vector.load %arg11[%c0_34, %c0_35] : memref<1x128xf32, #tpu.memory_space<vmem>>, vector<1x128xf32>
    %c0_36 = arith.constant 0 : index
    %c0_37 = arith.constant 0 : index
    %62 = vector.load %arg12[%c0_36, %c0_37] : memref<1x128xf32, #tpu.memory_space<vmem>>, vector<1x128xf32>
    %cst_38 = arith.constant dense<0.000000e+00> : vector<8xf32>
    %63 = vector.multi_reduction <add>, %60, %cst_38 [1] : vector<8x128xf32> to vector<8xf32>
    %64 = vector.shape_cast %63 : vector<8xf32> to vector<8x1xf32>
    %cst_39 = arith.constant 1.280000e+02 : f32
    %65 = vector.broadcast %cst_39 : f32 to vector<8x1xf32>
    %66 = arith.divf %64, %65 : vector<8x1xf32>
    %67 = vector.broadcast %66 : vector<8x1xf32> to vector<8x128xf32>
    %68 = arith.subf %60, %67 : vector<8x128xf32>
    %69 = arith.mulf %68, %68 : vector<8x128xf32>
    %cst_40 = arith.constant dense<0.000000e+00> : vector<8xf32>
    %70 = vector.multi_reduction <add>, %69, %cst_40 [1] : vector<8x128xf32> to vector<8xf32>
    %71 = vector.shape_cast %70 : vector<8xf32> to vector<8x1xf32>
    %cst_41 = arith.constant 1.280000e+02 : f32
    %72 = vector.broadcast %cst_41 : f32 to vector<8x1xf32>
    %73 = arith.divf %71, %72 : vector<8x1xf32>
    %74 = vector.broadcast %66 : vector<8x1xf32> to vector<8x128xf32>
    %75 = arith.subf %60, %74 : vector<8x128xf32>
    %cst_42 = arith.constant 9.99999974E-6 : f32
    %76 = vector.broadcast %cst_42 : f32 to vector<8x1xf32>
    %77 = arith.addf %73, %76 : vector<8x1xf32>
    %78 = math.rsqrt %77 : vector<8x1xf32>
    %79 = vector.broadcast %78 : vector<8x1xf32> to vector<8x128xf32>
    %80 = arith.mulf %75, %79 : vector<8x128xf32>
    %81 = vector.broadcast %61 : vector<1x128xf32> to vector<8x128xf32>
    %82 = arith.mulf %80, %81 : vector<8x128xf32>
    %83 = vector.broadcast %62 : vector<1x128xf32> to vector<8x128xf32>
    %84 = arith.addf %82, %83 : vector<8x128xf32>
    %c0_43 = arith.constant 0 : index
    %c0_44 = arith.constant 0 : index
    %85 = vector.load %arg13[%c0_43, %c0_44] : memref<128x512xbf16, #tpu.memory_space<vmem>>, vector<128x512xbf16>
    %86 = arith.truncf %84 : vector<8x128xf32> to vector<8x128xbf16>
    %cst_45 = arith.constant dense<0.000000e+00> : vector<8x512xf32>
    %87 = tpu.matmul %86, %85, %cst_45 {dimension_numbers = #tpu.dot_dimension_numbers<[1], [0], [0], [1], [0, 0, 1, 1], [], []>} : vector<8x128xbf16>, vector<128x512xbf16>, vector<8x512xf32> -> vector<8x512xf32>
    %c0_46 = arith.constant 0 : index
    %c0_47 = arith.constant 0 : index
    %88 = vector.load %arg14[%c0_46, %c0_47] : memref<1x512xf32, #tpu.memory_space<vmem>>, vector<1x512xf32>
    %89 = vector.broadcast %88 : vector<1x512xf32> to vector<8x512xf32>
    %90 = arith.addf %87, %89 : vector<8x512xf32>
    %cst_48 = arith.constant 0.000000e+00 : f32
    %91 = vector.broadcast %cst_48 : f32 to vector<8x512xf32>
    %92 = arith.maximumf %90, %91 : vector<8x512xf32>
    %c0_49 = arith.constant 0 : index
    %c0_50 = arith.constant 0 : index
    %93 = vector.load %arg15[%c0_49, %c0_50] : memref<512x128xbf16, #tpu.memory_space<vmem>>, vector<512x128xbf16>
    %94 = arith.truncf %92 : vector<8x512xf32> to vector<8x512xbf16>
    %cst_51 = arith.constant dense<0.000000e+00> : vector<8x128xf32>
    %95 = tpu.matmul %94, %93, %cst_51 {dimension_numbers = #tpu.dot_dimension_numbers<[1], [0], [0], [1], [0, 0, 1, 1], [], []>} : vector<8x512xbf16>, vector<512x128xbf16>, vector<8x128xf32> -> vector<8x128xf32>
    %c0_52 = arith.constant 0 : index
    %c0_53 = arith.constant 0 : index
    %96 = vector.load %arg16[%c0_52, %c0_53] : memref<1x128xf32, #tpu.memory_space<vmem>>, vector<1x128xf32>
    %97 = vector.broadcast %96 : vector<1x128xf32> to vector<8x128xf32>
    %98 = arith.addf %95, %97 : vector<8x128xf32>
    %99 = arith.addf %98, %84 : vector<8x128xf32>
    %c0_54 = arith.constant 0 : index
    %c0_55 = arith.constant 0 : index
    %100 = vector.load %arg17[%c0_54, %c0_55] : memref<1x128xf32, #tpu.memory_space<vmem>>, vector<1x128xf32>
    %c0_56 = arith.constant 0 : index
    %c0_57 = arith.constant 0 : index
    %101 = vector.load %arg18[%c0_56, %c0_57] : memref<1x128xf32, #tpu.memory_space<vmem>>, vector<1x128xf32>
    %cst_58 = arith.constant dense<0.000000e+00> : vector<8xf32>
    %102 = vector.multi_reduction <add>, %99, %cst_58 [1] : vector<8x128xf32> to vector<8xf32>
    %103 = vector.shape_cast %102 : vector<8xf32> to vector<8x1xf32>
    %cst_59 = arith.constant 1.280000e+02 : f32
    %104 = vector.broadcast %cst_59 : f32 to vector<8x1xf32>
    %105 = arith.divf %103, %104 : vector<8x1xf32>
    %106 = vector.broadcast %105 : vector<8x1xf32> to vector<8x128xf32>
    %107 = arith.subf %99, %106 : vector<8x128xf32>
    %108 = arith.mulf %107, %107 : vector<8x128xf32>
    %cst_60 = arith.constant dense<0.000000e+00> : vector<8xf32>
    %109 = vector.multi_reduction <add>, %108, %cst_60 [1] : vector<8x128xf32> to vector<8xf32>
    %110 = vector.shape_cast %109 : vector<8xf32> to vector<8x1xf32>
    %cst_61 = arith.constant 1.280000e+02 : f32
    %111 = vector.broadcast %cst_61 : f32 to vector<8x1xf32>
    %112 = arith.divf %110, %111 : vector<8x1xf32>
    %113 = vector.broadcast %105 : vector<8x1xf32> to vector<8x128xf32>
    %114 = arith.subf %99, %113 : vector<8x128xf32>
    %cst_62 = arith.constant 9.99999974E-6 : f32
    %115 = vector.broadcast %cst_62 : f32 to vector<8x1xf32>
    %116 = arith.addf %112, %115 : vector<8x1xf32>
    %117 = math.rsqrt %116 : vector<8x1xf32>
    %118 = vector.broadcast %117 : vector<8x1xf32> to vector<8x128xf32>
    %119 = arith.mulf %114, %118 : vector<8x128xf32>
    %120 = vector.broadcast %100 : vector<1x128xf32> to vector<8x128xf32>
    %121 = arith.mulf %119, %120 : vector<8x128xf32>
    %122 = vector.broadcast %101 : vector<1x128xf32> to vector<8x128xf32>
    %123 = arith.addf %121, %122 : vector<8x128xf32>
    %c0_63 = arith.constant 0 : index
    %c0_64 = arith.constant 0 : index
    %c0_65 = arith.constant 0 : index
    %124 = vector.load %arg19[%c0_63, %c0_64, %c0_65] : memref<1x8x128xf32, #tpu.memory_space<vmem>>, vector<1x8x128xf32>
    %125 = vector.shape_cast %124 : vector<1x8x128xf32> to vector<8x128xf32>
    %126 = vector.shape_cast %123 : vector<8x128xf32> to vector<1x8x128xf32>
    tpu.vector_store %arg19[%c0_63, %c0_64, %c0_65], %126 {strides = array<i32>} : memref<1x8x128xf32, #tpu.memory_space<vmem>>, vector<1x8x128xf32>,
    return
  }
  func.func @transform_0(%arg0: i32) -> (i32, i32, i32) {
    %c0_i32 = arith.constant 0 : i32
    %c0_i32_0 = arith.constant 0 : i32
    %c0_i32_1 = arith.constant 0 : i32
    return %arg0, %c0_i32, %c0_i32_0 : i32, i32, i32
  }
  func.func @transform_1(%arg0: i32) -> (i32, i32, i32) {
    %c0_i32 = arith.constant 0 : i32
    %c0_i32_0 = arith.constant 0 : i32
    %c0_i32_1 = arith.constant 0 : i32
    return %arg0, %c0_i32, %c0_i32_0 : i32, i32, i32
  }
  func.func @transform_2(%arg0: i32) -> (i32, i32, i32) {
    %c0_i32 = arith.constant 0 : i32
    %c0_i32_0 = arith.constant 0 : i32
    %c0_i32_1 = arith.constant 0 : i32
    return %arg0, %c0_i32, %c0_i32_0 : i32, i32, i32
  }
  func.func @transform_3(%arg0: i32) -> (i32, i32, i32) {
    %c0_i32 = arith.constant 0 : i32
    %c0_i32_0 = arith.constant 0 : i32
    %c0_i32_1 = arith.constant 0 : i32
    return %arg0, %c0_i32, %c0_i32_0 : i32, i32, i32
  }
  func.func @transform_4(%arg0: i32) -> (i32, i32) {
    %c0_i32 = arith.constant 0 : i32
    %c0_i32_0 = arith.constant 0 : i32
    %c0_i32_1 = arith.constant 0 : i32
    return %c0_i32, %c0_i32_0 : i32, i32
  }
  func.func @transform_5(%arg0: i32) -> (i32, i32) {
    %c0_i32 = arith.constant 0 : i32
    %c0_i32_0 = arith.constant 0 : i32
    %c0_i32_1 = arith.constant 0 : i32
    return %c0_i32, %c0_i32_0 : i32, i32
  }
  func.func @transform_6(%arg0: i32) -> (i32, i32) {
    %c0_i32 = arith.constant 0 : i32
    %c0_i32_0 = arith.constant 0 : i32
    %c0_i32_1 = arith.constant 0 : i32
    return %c0_i32, %c0_i32_0 : i32, i32
  }
  func.func @transform_7(%arg0: i32) -> (i32, i32) {
    %c0_i32 = arith.constant 0 : i32
    %c0_i32_0 = arith.constant 0 : i32
    %c0_i32_1 = arith.constant 0 : i32
    return %c0_i32, %c0_i32_0 : i32, i32
  }
  func.func @transform_8(%arg0: i32) -> (i32, i32) {
    %c0_i32 = arith.constant 0 : i32
    %c0_i32_0 = arith.constant 0 : i32
    %c0_i32_1 = arith.constant 0 : i32
    return %c0_i32, %c0_i32_0 : i32, i32
  }
  func.func @transform_9(%arg0: i32) -> (i32, i32) {
    %c0_i32 = arith.constant 0 : i32
    %c0_i32_0 = arith.constant 0 : i32
    %c0_i32_1 = arith.constant 0 : i32
    return %c0_i32, %c0_i32_0 : i32, i32
  }
  func.func @transform_10(%arg0: i32) -> (i32, i32) {
    %c0_i32 = arith.constant 0 : i32
    %c0_i32_0 = arith.constant 0 : i32
    %c0_i32_1 = arith.constant 0 : i32
    return %c0_i32, %c0_i32_0 : i32, i32
  }
  func.func @transform_11(%arg0: i32) -> (i32, i32) {
    %c0_i32 = arith.constant 0 : i32
    %c0_i32_0 = arith.constant 0 : i32
    %c0_i32_1 = arith.constant 0 : i32
    return %c0_i32, %c0_i32_0 : i32, i32
  }
  func.func @transform_12(%arg0: i32) -> (i32, i32) {
    %c0_i32 = arith.constant 0 : i32
    %c0_i32_0 = arith.constant 0 : i32
    %c0_i32_1 = arith.constant 0 : i32
    return %c0_i32, %c0_i32_0 : i32, i32
  }
  func.func @transform_13(%arg0: i32) -> (i32, i32) {
    %c0_i32 = arith.constant 0 : i32
    %c0_i32_0 = arith.constant 0 : i32
    %c0_i32_1 = arith.constant 0 : i32
    return %c0_i32, %c0_i32_0 : i32, i32
  }
  func.func @transform_14(%arg0: i32) -> (i32, i32) {
    %c0_i32 = arith.constant 0 : i32
    %c0_i32_0 = arith.constant 0 : i32
    %c0_i32_1 = arith.constant 0 : i32
    return %c0_i32, %c0_i32_0 : i32, i32
  }
  func.func @transform_15(%arg0: i32) -> (i32, i32) {
    %c0_i32 = arith.constant 0 : i32
    %c0_i32_0 = arith.constant 0 : i32
    %c0_i32_1 = arith.constant 0 : i32
    return %c0_i32, %c0_i32_0 : i32, i32
  }
  func.func @transform_16(%arg0: i32) -> (i32, i32) {
    %c0_i32 = arith.constant 0 : i32
    %c0_i32_0 = arith.constant 0 : i32
    %c0_i32_1 = arith.constant 0 : i32
    return %c0_i32, %c0_i32_0 : i32, i32
  }
  func.func @transform_17(%arg0: i32) -> (i32, i32) {
    %c0_i32 = arith.constant 0 : i32
    %c0_i32_0 = arith.constant 0 : i32
    %c0_i32_1 = arith.constant 0 : i32
    return %c0_i32, %c0_i32_0 : i32, i32
  }
  func.func @transform_18(%arg0: i32) -> (i32, i32, i32) {
    %c0_i32 = arith.constant 0 : i32
    %c0_i32_0 = arith.constant 0 : i32
    %c0_i32_1 = arith.constant 0 : i32
    return %arg0, %c0_i32, %c0_i32_0 : i32, i32, i32
  }
}

</mosaic_0001>

<bundles_post_ra>
// kernel: transformer_block.1
= control target key start
LH: loop header
LB: loop body
LE: loop exit
PB: predicated region body
PF: predicated region fallthrough
CT: control target
= control target key end

     0   :  { %s4064_s0 = inlined_call_operand.vmem [shape: f32[2,8,128], index: 0, kind: input, shape index: {}]   ;;  %s4065_s1 = inlined_call_operand.hbm [shape: f32[2,8,128], index: 1, kind: input, shape index: {}]   ;;  %s4066_s2 = inlined_call_operand.hbm [shape: f32[2,8,128], index: 2, kind: input, shape index: {}]   ;;  %s4067_s3 = inlined_call_operand.hbm [shape: f32[2,8,8], index: 3, kind: input, shape index: {}]   ;;  %s4068_s4 = inlined_call_operand.hbm [shape: bf16[128,128], index: 4, kind: input, shape index: {}]   ;;  %s4069_s5 = inlined_call_operand.hbm [shape: bf16[128,128], index: 5, kind: input, shape index: {}]   ;;  %s4070_s6 = inlined_call_operand.hbm [shape: bf16[128,128], index: 6, kind: input, shape index: {}]   ;;  %s4071_s7 = inlined_call_operand.hbm [shape: bf16[128,128], index: 7, kind: input, shape index: {}]   ;;  %s4072_s8 = inlined_call_operand.hbm [shape: f32[1,128], index: 8, kind: input, shape index: {}]   ;;  %s4073_s9 = inlined_call_operand.vmem [shape: f32[4,128], index: 9, kind: input, shape index: {}]   ;;  %s4074_s10 = inlined_call_operand.hbm [shape: f32[1,128], index: 10, kind: input, shape index: {}]   ;;  %s4075_s11 = inlined_call_operand.hbm [shape: f32[1,128], index: 11, kind: input, shape index: {}]   ;;  %s4076_s12 = inlined_call_operand.hbm [shape: bf16[128,512], index: 12, kind: input, shape index: {}]   ;;  %s4077_s13 = inlined_call_operand.hbm [shape: f32[1,512], index: 13, kind: input, shape index: {}]   ;;  %s4078_s14 = inlined_call_operand.hbm [shape: bf16[512,128], index: 14, kind: input, shape index: {}]   ;;  %s4079_s15 = inlined_call_operand.hbm [shape: f32[1,128], index: 15, kind: input, shape index: {}]   ;;  %s4080_s16 = inlined_call_operand.hbm [shape: f32[1,128], index: 16, kind: input, shape index: {}]   ;;  %s4081_s17 = inlined_call_operand.hbm [shape: f32[1,128], index: 17, kind: input, shape index: {}]   ;;  %s4082_s18 = inlined_call_operand.hbm [shape: f32[2,8,128], index: 18, kind: output, shape index: {}]  }
   0x1   :  { %4099 = sst [smem:[#allocation45_spill]] %s4064_s0 }
   0x2   :  { %4100 = sst [smem:[#allocation46_spill]] %s4065_s1 }
   0x3   :  { %4101 = sst [smem:[#allocation47_spill]] %s4066_s2 }
   0x4   :  { %4102 = sst [smem:[#allocation48_spill]] %s4068_s4 }
   0x5   :  { %4103 = sst [smem:[#allocation49_spill]] %s4069_s5 }
   0x6   :  { %4104 = sst [smem:[#allocation50_spill]] %s4070_s6 }
   0x7   :  { %4105 = sst [smem:[#allocation51_spill]] %s4071_s7 }
   0x8   :  { %4106 = sst [smem:[#allocation52_spill]] %s4072_s8 }
   0x9   :  { %4107 = sst [smem:[#allocation53_spill]] %s4073_s9 }
   0xa   :  { %4108 = sst [smem:[#allocation54_spill]] %s4075_s11 }
   0xb   :  { %4109 = sst [smem:[#allocation55_spill]] %s4077_s13 }
   0xc   :  { %4110 = sst [smem:[#allocation56_spill]] %s4079_s15 }
   0xd   :  { %4111 = sst [smem:[#allocation57_spill]] %s4082_s18 }
   0xe   :  { %23 = vsyncpa [#allocation3], 0 }
   0xf   :  { %25 = vsyncpa [#allocation3 + $0x1], 0 }
  0x10   :  { %26 = vsyncpa [#allocation6], 0 }
  0x11   :  { %28 = vsyncpa [#allocation6 + $0x1], 0 }
  0x12   :  { %29 = vsyncpa [#allocation9], 0 }
  0x13   :  { %30 = vsyncpa [#allocation12], 0 }
  0x14   :  { %31 = vsyncpa [#allocation15], 0 }
  0x15   :  { %32 = vsyncpa [#allocation18], 0 }
  0x16   :  { %33 = vsyncpa [#allocation21], 0 }
  0x17   :  { %34 = vsyncpa [#allocation24], 0 }
  0x18   :  { %35 = vsyncpa [#allocation27], 0 }
  0x19   :  { %36 = vsyncpa [#allocation4], 0 }
  0x1a   :  { %38 = vsyncpa [#allocation4 + $0x1], 0  ;;  %s3691_s27 = smov 0   ;;  %s3693_s28 = smov 0  }
  0x1b   :  { %s3695_s29 = smov 0   ;;  %s3697_s30 = smov 0  }
  0x1c LB: > { %4112 = sst [smem:[#allocation39_spill]] %s3564_s27  ;;  %s3715_s20 = sadd.s32 4294967295, %s3576_s30   ;;  %s3576_s30 = sphi %s3697_s30, %s4159_s30   ;;  %s3572_s29 = sphi %s3695_s29, %s4163_s29   ;;  %s3568_s28 = sphi %s3693_s28, %s4162_s28   ;;  %s3564_s27 = sphi %s3691_s27, %s4161_s27  }
  0x1d   : > { %4113 = sst [smem:[#allocation40_spill]] %s3576_s30  ;;  %p2252_p0 = scmp.ge.s32.totalorder %s3576_s30, 1 }
  0x1e   : > { %s4114_s4 = sld [smem:[#allocation48_spill]]  ;;  %p4095_p1 = scmp.eq.s32.totalorder %s3715_s20, 0 }
  0x1f   : > { %p473_p2 = scmp.lt.s32.totalorder %s3576_s30, 3  ;;  %s3578_s22 = smov [#allocation8]  }
  0x20   : > { %s486_s2 = sshll.u32 %s3578_s22, 4  ;;  %s4117_s6 = sld [smem:[#allocation50_spill]]  ;;  %s487_s2 = int_to_ptr.vmem [resolvable:$true] %s486_s2 }
  0x21   : > { %p3720_p3 = pnand %p2252_p0, %p473_p2  ;;  %s4119_s8 = sld [smem:[#allocation52_spill]] }
  0x22   : > { %s4087_s9 = smov 64   ;;  %s4120_s11 = sld [smem:[#allocation54_spill]] }
  0x23   : > { %s4115_s21 = scalar_select %p3720_p3, 1, 0 }
  0x24   : > { %s484_s1 = sshll.u32 %s4114_s4, 4  ;;  %p2838_p4 = pneg %p3720_p3  ;;  %s485_s1 = int_to_ptr.hbm [resolvable:$true] %s484_s1 }
  0x25   : > { %4116 = sst [smem:[#allocation41_spill]] %s4115_s21  ;;  %s3579_s4 = smov [#allocation11]  }
  0x26   : > { %s512_s25 = sshll.u32 %s4117_s6, 4  ;;  %p3732_p6 = pnand %p2838_p4, %p4095_p1  ;;  %s513_s25 = int_to_ptr.hbm [resolvable:$true] %s512_s25 }
  0x27   : > { %s541_s22 = sshll.u32 %s4119_s8, 4  ;;  %s514_s18 = sshll.u32 %s3579_s4, 4  ;;  %s515_s18 = int_to_ptr.vmem [resolvable:$true] %s514_s18  ;;  %s542_s22 = int_to_ptr.hbm [resolvable:$true] %s541_s22 }
  0x28   : > { %s4089_s21 = smov 4   ;;  %s568_s0 = sshll.u32 %s4120_s11, 4  ;;  %s569_s0 = int_to_ptr.hbm [resolvable:$true] %s568_s0 }
  0x29   : > { %2841 = dma.hbm_to_vmem [thread:$0]  (!%p3732_p6), %s485_s1, 1024, %s487_s2, [#allocation9], %s4087_s9, %s4087_s9, %s4089_s21  }
  0x2a   : > { %2847 = dma.hbm_to_vmem [thread:$0]  (!%p3732_p6), %s513_s25, 1024, %s515_s18, [#allocation12], %s4087_s9, %s4087_s9, %s4089_s21  }
  0x2b   : > { %s3582_s4 = smov [#allocation14]   ;;  %s3583_s1 = smov [#allocation17]  }
  0x2c   : > { %s543_s19 = sshll.u32 %s3582_s4, 4  ;;  %s570_s2 = sshll.u32 %s3583_s1, 4  ;;  %s544_s19 = int_to_ptr.vmem [resolvable:$true] %s543_s19  ;;  %s571_s2 = int_to_ptr.vmem [resolvable:$true] %s570_s2 }
  0x2d   : > { %2853 = dma.hbm_to_vmem [thread:$0]  (!%p3732_p6), %s542_s22, 16, %s544_s19, [#allocation15]  }
  0x2e   : > { %s4121_s13 = sld [smem:[#allocation55_spill]]  ;;  %s3584_s24 = smov [#allocation20]  }
  0x2f   : > { %2859 = dma.hbm_to_vmem [thread:$0]  (!%p3732_p6), %s569_s0, 16, %s571_s2, [#allocation18]  }
  0x30   : > { %s4122_s15 = sld [smem:[#allocation56_spill]]  ;;  %s596_s4 = sshll.u32 %s3584_s24, 4  ;;  %s597_s4 = int_to_ptr.vmem [resolvable:$true] %s596_s4 }
  0x31   : > { %s3585_s6 = smov [#allocation23]   ;;  %s2251_s0 = sadd.s32 4294967294, %s3576_s30  }
  0x32   : > { %s622_s8 = sshll.u32 %s3585_s6, 4  ;;  %s3768_s19 = sadd.s32 1, %s3576_s30   ;;  %s623_s8 = int_to_ptr.vmem [resolvable:$true] %s622_s8 }
  0x33   : > { %4123 = sst [smem:[#allocation42_spill]] %s3768_s19  ;;  %s74_s1 = ssub.s32 %s3576_s30, %s3768_s19 }
  0x34   : > { %s594_s18 = sshll.u32 %s4121_s13, 4  ;;  %s77_s2 = sadd.s32 1, %s3572_s29  ;;  %s595_s18 = int_to_ptr.hbm [resolvable:$true] %s594_s18 }
  0x35   : > { %2865 = dma.hbm_to_vmem [thread:$0]  (!%p3732_p6), %s595_s18, 64, %s597_s4, [#allocation21]  }
  0x36   : > { %s620_s22 = sshll.u32 %s4122_s15, 4  ;;  %p75_p7 = scmp.eq.s32.totalorder %s74_s1, 0  ;;  %s621_s22 = int_to_ptr.hbm [resolvable:$true] %s620_s22 }
  0x37   : > { %2871 = dma.hbm_to_vmem [thread:$0]  (!%p3732_p6), %s621_s22, 16, %s623_s8, [#allocation24]  }
  0x38   : > { %p84_p8 = scmp.ne.s32.totalorder %s3572_s29, %s3568_s28  ;;  %p85_p9 = scmp.eq.s32.totalorder %s3576_s30, 0 }
  0x39   : > { %p90_p10 = scmp.ne.s32.totalorder %s3568_s28, %s3564_s27  ;;  %p460_p13 = scmp.eq.s32.totalorder %s3715_s20, 1 }
  0x3a   : > { %s3779_s18 = scalar_select %p75_p7, %s3572_s29, %s77_s2  }
  0x3b   : > { %p86_p11 = por %p85_p9, %p84_p8  ;;  %p3783_p12 = por %p4095_p1, %p90_p10 }
  0x3c   : > { %4124 = sst [smem:[#allocation43_spill]] %s3779_s18  ;;  %p466_p0 = scmp.eq.s32.totalorder %s2251_s0, 1 }
  0x3d   : > { %p2905_p2 = scmp.lt.s32.totalorder %s3576_s30, 2  ;;  %s4091_s23 = sand.u32 1, %s3572_s29  }
  0x3e   : > { %p3790_p4 = por %p460_p13, %p84_p8  ;;  %p3794_p5 = por %p466_p0, %p90_p10 }
  0x3f   : > { %s3800_s4 = sshll.u32 %s4091_s23, 3  ;;  %s3803_s6 = sshll.u32 %s3576_s30, 3 }
  0x40   : > { %s4127_s24 = scalar_select %p3794_p5, 1, 0 }
  0x41   : > { %p3805_p7 = pnand %p2905_p2, %p86_p11  ;;  %s683_s0 = sand.u32 1, %s3576_s30  }
  0x42   : > { %4128 = sst [smem:[#allocation44_spill]] %s4127_s24  ;;  %s687_s13 = scalar_lea.vmem [#allocation5], %s3800_s4 }
  0x43   : > { %s4130_s9 = sld [smem:[#allocation47_spill]]  ;;  %s695_s15 = sshll.u32 %s687_s13, 4  ;;  %s696_s15 = int_to_ptr.vmem [resolvable:$true] %s695_s15 }
  0x44   : > { %s3815_s23 = scalar_lea.sflag [#allocation6], %s683_s0  ;;  %p3182_p9 = pneg %p3805_p7 }
  0x49   : > { %s691_s21 = scalar_lea.hbm %s4130_s9, %s3803_s6 }
  0x4a   : > { %s693_s11 = sshll.u32 %s691_s21, 4  ;;  %s3185_s21 = scalar_lea.hbm %s4130_s9, 16  ;;  %s694_s11 = int_to_ptr.hbm [resolvable:$true] %s693_s11 }
  0x4b   : > { %s3178_s18 = sshra.s32 %s694_s11, 4  ;;  %s3179_s18 = int_to_ptr.hbm [resolvable:$true] %s3178_s18 }
  0x4c   : > { %s3180_s19 = scalar_lea.hbm %s3179_s18, 8  ;;  %p3186_p13 = scmp.lt.s32.totalorder %s3179_s18, %s4130_s9 }
  0x4d   : > { %p3181_p8 = scmp.ne.s32.totalorder %s3179_s18, %s3180_s19  ;;  %p3187_p0 = scmp.lt.s32.totalorder %s3185_s21, %s3180_s19 }
  0x4f   : > { %p3183_p10 = pnand %p3182_p9, %p3181_p8  ;;  %p3188_p2 = por %p3187_p0, %p3186_p13 }
  0x51   : > { %p3184_p11 = pneg %p3183_p10 }
  0x53   : > { %p3189_p1 = pnand %p3188_p2, %p3184_p11 }
  0x55   : > { %3192 = shalt.err (!%p3189_p1)
}
  0x56   : > { %2884 = dma.hbm_to_vmem [thread:$0]  (!%p3805_p7), %s694_s11, 128, %s696_s15, %s3815_s23  }
  0x57   : > { %s4131_s5 = sld [smem:[#allocation49_spill]]  ;;  %s3586_s30 = smov [#allocation10]  }
  0x58   : > { %s500_s1 = sshll.u32 %s3586_s30, 4  ;;  %s4132_s7 = sld [smem:[#allocation51_spill]]  ;;  %s501_s1 = int_to_ptr.vmem [resolvable:$true] %s500_s1 }
  0x59   : > { %s4133_s2 = smov 4   ;;  %s4134_s13 = smov 64  }
  0x5a   : > { %s3587_s11 = smov [#allocation13]   ;;  %s556_s0 = sshll.u32 %s4074_s10, 4  ;;  %s557_s0 = int_to_ptr.hbm [resolvable:$true] %s556_s0 }
  0x5b   : > { %s528_s15 = sshll.u32 %s3587_s11, 4  ;;  %s579_s19 = sshll.u32 %s4076_s12, 4  ;;  %s529_s15 = int_to_ptr.vmem [resolvable:$true] %s528_s15  ;;  %s580_s19 = int_to_ptr.hbm [resolvable:$true] %s579_s19 }
  0x5c   : > { %s3589_s9 = smov [#allocation19]   ;;  %s3590_s24 = smov 256  }
  0x5d   : > { %s498_s27 = sshll.u32 %s4131_s5, 4  ;;  %s581_s11 = sshll.u32 %s3589_s9, 4  ;;  %s499_s27 = int_to_ptr.hbm [resolvable:$true] %s498_s27  ;;  %s582_s11 = int_to_ptr.vmem [resolvable:$true] %s581_s11 }
  0x5e   : > { %s526_s21 = sshll.u32 %s4132_s7, 4  ;;  %s3591_s5 = smov 16   ;;  %s527_s21 = int_to_ptr.hbm [resolvable:$true] %s526_s21 }
  0x5f   : > { %2844 = dma.hbm_to_vmem [thread:$0]  (!%p3732_p6), %s499_s27, 1024, %s501_s1, [#allocation9], %s4134_s13, %s4134_s13, %s4133_s2  }
  0x60   : > { %2850 = dma.hbm_to_vmem [thread:$0]  (!%p3732_p6), %s527_s21, 1024, %s529_s15, [#allocation12], %s4134_s13, %s4134_s13, %s4133_s2  }
  0x61   : > { %s3588_s27 = smov [#allocation16]   ;;  %s605_s30 = sshll.u32 %s4078_s14, 4  ;;  %s606_s30 = int_to_ptr.hbm [resolvable:$true] %s605_s30 }
  0x62   : > { %s558_s1 = sshll.u32 %s3588_s27, 4  ;;  %s3592_s18 = smov [#allocation22]   ;;  %s559_s1 = int_to_ptr.vmem [resolvable:$true] %s558_s1 }
  0x63   : > { %2856 = dma.hbm_to_vmem [thread:$0]  (!%p3732_p6), %s557_s0, 16, %s559_s1, [#allocation15]  }
  0x64   : > { %2862 = dma.hbm_to_vmem [thread:$0]  (!%p3732_p6), %s580_s19, 4096, %s582_s11, [#allocation18], %s3590_s24, %s3590_s24, %s3591_s5  }
  0x65   : > { %s607_s27 = sshll.u32 %s3592_s18, 4  ;;  %s632_s1 = sshll.u32 %s4080_s16, 4  ;;  %s608_s27 = int_to_ptr.vmem [resolvable:$true] %s607_s27  ;;  %s633_s1 = int_to_ptr.hbm [resolvable:$true] %s632_s1 }
  0x66   : > { %2868 = dma.hbm_to_vmem [thread:$0]  (!%p3732_p6), %s606_s30, 4096, %s608_s27, [#allocation21], %s4134_s13, %s4134_s13, %s4133_s2  }
  0x67   : > { %s3593_s5 = smov [#allocation25]   ;;  %s644_s24 = sshll.u32 %s4081_s17, 4  ;;  %s645_s24 = int_to_ptr.hbm [resolvable:$true] %s644_s24 }
  0x68   : > { %s634_s19 = sshll.u32 %s3593_s5, 4  ;;  %s3594_s7 = smov [#allocation26]   ;;  %s635_s19 = int_to_ptr.vmem [resolvable:$true] %s634_s19 }
  0x69   : > { %2874 = dma.hbm_to_vmem [thread:$0]  (!%p3732_p6), %s633_s1, 16, %s635_s19, [#allocation24]  }
  0x6a   : > { %s646_s21 = sshll.u32 %s3594_s7, 4  ;;  %s4135_s0 = sld [smem:[#allocation46_spill]]  ;;  %s647_s21 = int_to_ptr.vmem [resolvable:$true] %s646_s21 }
  0x6b   : > { %2877 = dma.hbm_to_vmem [thread:$0]  (!%p3732_p6), %s645_s24, 16, %s647_s21, [#allocation27]  }
  0x6c   : > { %s668_s30 = scalar_lea.vmem [#allocation2], %s3800_s4  ;;  %s4136_s5 = sand.u32 1, %s3572_s29  }
  0x6d   : > { %s676_s27 = sshll.u32 %s668_s30, 4  ;;  %s665_s9 = scalar_lea.sflag [#allocation3], %s4136_s5  ;;  %s677_s27 = int_to_ptr.vmem [resolvable:$true] %s676_s27 }
  0x70   : > { %s672_s2 = scalar_lea.hbm %s4135_s0, %s3803_s6  ;;  %s3425_s26 = scalar_lea.hbm %s4135_s0, 16 }
  0x71   : > { %s674_s13 = sshll.u32 %s672_s2, 4  ;;  %s675_s13 = int_to_ptr.hbm [resolvable:$true] %s674_s13 }
  0x72   : > { %s3418_s11 = sshra.s32 %s675_s13, 4  ;;  %s3419_s11 = int_to_ptr.hbm [resolvable:$true] %s3418_s11 }
  0x73   : > { %s3420_s1 = scalar_lea.hbm %s3419_s11, 8  ;;  %p3426_p6 = scmp.lt.s32.totalorder %s3419_s11, %s4135_s0 }
  0x74   : > { %p3421_p1 = scmp.ne.s32.totalorder %s3419_s11, %s3420_s1  ;;  %p3427_p11 = scmp.lt.s32.totalorder %s3425_s26, %s3420_s1 }
  0x76   : > { %p3423_p8 = pnand %p3421_p1, %p3182_p9  ;;  %p3428_p13 = por %p3427_p11, %p3426_p6 }
  0x78   : > { %p3424_p10 = pneg %p3423_p8 }
  0x7a   : > { %p3429_p0 = pnand %p3428_p13, %p3424_p10 }
  0x7c   : > { %3432 = shalt.err (!%p3429_p0)
}
  0x7d   : > { %2881 = dma.hbm_to_vmem [thread:$0]  (!%p3805_p7), %s675_s13, 128, %s677_s27, %s665_s9  }
  0x7e   : > { %s710_s2 = scalar_lea.hbm %s4067_s3, %s3803_s6  ;;  %s706_s5 = scalar_lea.vmem [#allocation7], %s3800_s4 }
  0x7f   : > { %s712_s30 = sshll.u32 %s710_s2, 4  ;;  %s714_s19 = sshll.u32 %s706_s5, 4  ;;  %s713_s30 = int_to_ptr.hbm [resolvable:$true] %s712_s30  ;;  %s715_s19 = int_to_ptr.vmem [resolvable:$true] %s714_s19 }
  0x80   : > { %s3448_s11 = sshra.s32 %s713_s30, 4  ;;  %s3455_s13 = scalar_lea.hbm %s4067_s3, 16  ;;  %s3449_s11 = int_to_ptr.hbm [resolvable:$true] %s3448_s11 }
  0x81   : > { %s3450_s1 = scalar_lea.hbm %s3449_s11, 8  ;;  %p3456_p10 = scmp.lt.s32.totalorder %s3449_s11, %s4067_s3 }
  0x82   : > { %p3451_p2 = scmp.ne.s32.totalorder %s3449_s11, %s3450_s1  ;;  %p3457_p6 = scmp.lt.s32.totalorder %s3455_s13, %s3450_s1 }
  0x84   : > { %p3453_p1 = pnand %p3451_p2, %p3182_p9  ;;  %p3458_p11 = por %p3457_p6, %p3456_p10 }
  0x86   : > { %p3454_p8 = pneg %p3453_p1 }
  0x88   : > { %p3459_p13 = pnand %p3458_p11, %p3454_p8 }
  0x8a   : > { %3462 = shalt.err (!%p3459_p13)
}
  0x8b   : > { %2887 = dma.hbm_to_vmem [thread:$0]  (!%p3805_p7), %s713_s30, 128, %s715_s19, %s3815_s23  }
  0x8c   : > { %723 = sbr.rel (%p3720_p3) target bundleno = 1845 (0x735), region = 92  ;;  %s3913_s6 = sand.u32 (!%p3720_p3), 1, %s3568_s28  }
  0x8d   : > { %s3916_s24 = sshll.u32 (!%p3720_p3), %s3913_s6, 3  ;;  %s726_s21 = scalar_lea.sflag (!%p3720_p3), [#allocation3], %s3913_s6 }
  0x8e   : > { %s729_s15 = scalar_lea.vmem (!%p3720_p3), [#allocation2], %s3916_s24 }
  0x91   : > { %3523 = dma.done.wait (%p3783_p12), %s726_s21, 128  }
  0x92   : > { %3525 = vsyncadd (%p3783_p12), %s726_s21, 4294967168  ;;  %s735_s23 = sand.u32 1, %s3715_s20   ;;  %s739_s18 = scalar_lea.vmem [#allocation5], %s3916_s24 }
  0x93   : > { %s736_s8 = scalar_lea.sflag [#allocation6], %s735_s23 }
  0x94   : > { %3527 = dma.done.wait (%p3783_p12), %s736_s8, 256  }
  0x95   : > { %3529 = vsyncadd (%p3783_p12), %s736_s8, 4294967040  ;;  %s749_s2 = scalar_lea.vmem [#allocation7], %s3916_s24  ;;  %p4138_p3 = scmp.eq.s32.totalorder %s3715_s20, 0 }
  0x97   : > { %3531 = dma.done.wait (%p4138_p3), [#allocation9], 2048   ;;  %p4139_p7 = pmov %p4138_p3 }
  0x98   : > { %p4140_p9 = pmov %p4138_p3 }
  0x99   : > { %3533 = vsyncadd (%p4139_p7), [#allocation9], 4294965248 }
  0x9a   : > { %3535 = dma.done.wait (%p4140_p9), [#allocation12], 2048   ;;  %p4141_p0 = pmov %p4138_p3 }
  0x9c   : > { %3537 = vsyncadd (%p4141_p0), [#allocation12], 4294965248  ;;  %p4142_p2 = pmov %p4141_p0 }
  0x9d   : > { %p4143_p1 = pmov %p4141_p0 }
  0x9e   : > { %3539 = dma.done.wait (%p4142_p2), [#allocation15], 32  }
  0x9f   : > { %3541 = vsyncadd (%p4143_p1), [#allocation15], 4294967264  ;;  %p4144_p12 = pmov %p4141_p0 }
  0xa0   : > { %p4145_p8 = pmov %p4141_p0 }
  0xa1   : > { %3543 = dma.done.wait (%p4144_p12), [#allocation18], 4112  }
  0xa2   : > { %3545 = vsyncadd (%p4145_p8), [#allocation18], 4294963184  ;;  %p4146_p10 = pmov %p4141_p0 }
  0xa3   : > { %p4147_p6 = pmov %p4141_p0 }
  0xa4   : > { %3547 = dma.done.wait (%p4146_p10), [#allocation21], 4160  }
  0xa5   : > { %3549 = vsyncadd (%p4147_p6), [#allocation21], 4294963136  ;;  %p4148_p11 = pmov %p4141_p0 }
  0xa6   : > { %p4149_p13 = pmov %p4141_p0 }
  0xa7   : > { %3551 = dma.done.wait (%p4148_p11), [#allocation24], 32  }
  0xa8   : > { %3553 = vsyncadd (%p4149_p13), [#allocation24], 4294967264  ;;  %p4150_p3 = pmov %p4141_p0 }
  0xa9   : > { %p4151_p7 = pmov %p4141_p0 }
  0xaa   : > { %3555 = dma.done.wait (%p4150_p3), [#allocation27], 16  }
  0xab   : > { %3557 = vsyncadd (%p4151_p7), [#allocation27], 4294967280  ;;  %v2689_v0 = vld [vmem:[#allocation11 + $0x38] sm:$0xff]  ;;  %v2688_v2 = vld [vmem:[#allocation11 + $0x30] sm:$0xff]  ;;  %s4152_s5 = sld [smem:[#allocation53_spill]]  ;;  %vm1175_vm1 = vcmask 64512  }
  0xac   : > { %v2697_v1 = vld [vmem:[#allocation10 + $0x38] sm:$0xff]  ;;  %954 = vmatpush.bf16.msra.mxu0 %v2689_v0  ;;  %v2696_v3 = vld [vmem:[#allocation10 + $0x30] sm:$0xff]  ;;  %v2687_v4 = vld [vmem:[#allocation11 + $0x28] sm:$0xff]  ;;  %p882_p9 = scmp.lt.s32.totalorder %s3715_s20, 1  ;;  %s4153_s26 = sld [smem:[#allocation45_spill]]  ;;  %vm1229_vm2 = vcmask 1043456  }
  0xad   : > { %1033 = vmatpush.bf16.msra.mxu1 %v2697_v1  ;;  %v2695_v5 = vld [vmem:[#allocation10 + $0x28] sm:$0xff]  ;;  %v2686_v6 = vld [vmem:[#allocation11 + $0x20] sm:$0xff]  ;;  %v2685_v8 = vld [vmem:[#allocation11 + $0x18] sm:$0xff]  ;;  %s2679_s27 = sshll.u32 %s3715_s20, 3  ;;  %s4154_s21 = sld [smem:[#allocation57_spill]] }
  0xae   : > { %v2694_v7 = vld [vmem:[#allocation10 + $0x20] sm:$0xff]  ;;  %v2693_v9 = vld [vmem:[#allocation10 + $0x18] sm:$0xff]  ;;  %v2684_v10 = vld [vmem:[#allocation11 + $0x10] sm:$0xff]  ;;  %s883_s19 = scalar_select %p882_p9, %s3715_s20, 1 }
  0xaf   : > { %v2692_v11 = vld [vmem:[#allocation10 + $0x10] sm:$0xff]  ;;  %v2683_v12 = vld [vmem:[#allocation11 + $0x8] sm:$0xff]  ;;  %v2682_v14 = vld [vmem:[#allocation11] sm:$0xff]  ;;  %s881_s23 = scalar_lea.vmem [#allocation28], %s3916_s24  ;;  %s1987_s20 = scalar_lea.sflag [#allocation4], %s3913_s6 }
  0xb0   : > { %955 = vmatpush.bf16.msra.mxu0 %v2688_v2  ;;  %v2691_v13 = vld [vmem:[#allocation10 + $0x8] sm:$0xff]  ;;  %v2690_v15 = vld [vmem:[#allocation10] sm:$0xff]  ;;  %v967_v17 = vld [vmem:[%s729_s15] sm:$0xff]  ;;  %s2291_s11 = sshll.u32 %s883_s19, 3  ;;  %s1999_s8 = sshll.u32 %s881_s23, 4  ;;  %s2000_s8 = int_to_ptr.vmem [resolvable:$true] %s1999_s8 }
  0xb1   : > { %1034 = vmatpush.bf16.msra.mxu1 %v2696_v3  ;;  %v3961_v16 = vld [vmem:[%s739_s18] sm:$0xff]  ;;  %v984_v19 = vpack.c.bf16 %v967_v17, %v967_v17  ;;  %v3970_v20 = vld [vmem:[%s4152_s5] sm:$0xf]  ;;  %v2705_v40 = vld [vmem:[#allocation8 + $0x38] sm:$0xff] }
  0xb2   : > { %v905_v18 = vpack.c.bf16 %v3961_v16, %v3961_v16  ;;  %v1126_v21 = vrot.slane %v3970_v20, 1  ;;  %v1129_v22 = vperm.slane %v3970_v20, 0  ;;  %v1127_v32 = vrot.slane %v3970_v20, 2  ;;  %v1163_v39 = vld [vmem:[%s749_s2] sm:$0xff]  ;;  %1112 = vmatpush.bf16.msra.mxu2 %v2705_v40  ;;  %v2703_v45 = vld [vmem:[#allocation8 + $0x28] sm:$0xff]  ;;  %v2702_v47 = vld [vmem:[#allocation8 + $0x20] sm:$0xff]  ;;  %s885_s13 = scalar_lea.vmem %s4153_s26, %s2291_s11 }
  0xb3   : > { %v1128_v33 = vrot.slane %v3970_v20, 3  ;;  %vm1164_vm0 = vcmp.lt.f32.partialorder %v1163_v39, 0.5  ;;  %v2704_v41 = vld [vmem:[#allocation8 + $0x30] sm:$0xff]  ;;  %v2701_v51 = vld [vmem:[#allocation8 + $0x18] sm:$0xff]  ;;  %v2699_v57 = vld [vmem:[#allocation8 + $0x8] sm:$0xff]  ;;  %s1997_s15 = scalar_lea.hbm %s4154_s21, %s2679_s27  ;;  %s3498_s19 = scalar_lea.hbm %s4154_s21, 16 }
  0xb4   : > { %956 = vmatpush.bf16.msra.mxu0 %v2687_v4  ;;  %v3974_v23 = vperm.slane %v1126_v21, 0  ;;  %v3981_v34 = vperm.slane %v1127_v32, 0  ;;  %v2700_v53 = vld [vmem:[#allocation8 + $0x10] sm:$0xff]  ;;  %v2698_v59 = vld [vmem:[#allocation8] sm:$0xff]  ;;  %s2001_s18 = sshll.u32 %s1997_s15, 4  ;;  %s2002_s18 = int_to_ptr.hbm [resolvable:$true] %s2001_s18 }
  0xb5   : > { %1035 = vmatpush.bf16.msra.mxu1 %v2695_v5  ;;  %v3983_v35 = vperm.slane %v1128_v33, 0  ;;  %v1046_v60 = vld [vmem:[%s885_s13] sm:$0xff]  ;;  %v2536_v20 = vld [vmem:[#allocation19 + $0xe0] sm:$0xf]  ;;  %s3492_s2 = sshra.s32 %s2002_s18, 4  ;;  %s3493_s2 = int_to_ptr.hbm [resolvable:$true] %s3492_s2 }
  0xb6   : > { %1113 = vmatpush.bf16.msra.mxu2 %v2704_v41  ;;  %v1063_v0 = vpack.c.bf16 %v1046_v60, %v1046_v60  ;;  %s3494_s25 = scalar_lea.hbm %s3493_s2, 8  ;;  %p3499_p12 = scmp.lt.s32.totalorder %s3493_s2, %s4154_s21 }
  0xb7   : > { %p3495_p0 = scmp.ne.s32.totalorder %s3493_s2, %s3494_s25  ;;  %p3500_p8 = scmp.lt.s32.totalorder %s3498_s19, %s3494_s25 }
  0xb8   : > { %957 = vmatpush.bf16.msra.mxu0 %v2686_v6 }
  0xb9   : > { %1036 = vmatpush.bf16.msra.mxu1 %v2694_v7  ;;  %p3496_p2 = pnand %p3495_p0, %p3790_p4  ;;  %p3501_p10 = por %p3500_p8, %p3499_p12 }
  0xba   : > { %1114 = vmatpush.bf16.msra.mxu2 %v2703_v45 }
  0xbb   : > { %p3497_p1 = pneg %p3496_p2 }
  0xbc   : > { %958 = vmatpush.bf16.msra.mxu0 %v2685_v8 }
  0xbd   : > { %1037 = vmatpush.bf16.msra.mxu1 %v2693_v9  ;;  %p3502_p6 = pnand %p3501_p10, %p3497_p1 }
  0xbe   : > { %1115 = vmatpush.bf16.msra.mxu2 %v2702_v47  ;;  %v2712_v47 = vld [vmem:[#allocation13 + $0x30] sm:$0xff] }
  0xc0   : > { %959 = vmatpush.bf16.msra.mxu0 %v2684_v10 }
  0xc1   : > { %1038 = vmatpush.bf16.msra.mxu1 %v2692_v11 }
  0xc2   : > { %1116 = vmatpush.bf16.msra.mxu2 %v2701_v51  ;;  %v2708_v51 = vld [vmem:[#allocation13 + $0x10] sm:$0xff] }
  0xc4   : > { %960 = vmatpush.bf16.msra.mxu0 %v2683_v12 }
  0xc5   : > { %1039 = vmatpush.bf16.msra.mxu1 %v2691_v13 }
  0xc6   : > { %1117 = vmatpush.bf16.msra.mxu2 %v2700_v53  ;;  %v2706_v53 = vld [vmem:[#allocation13] sm:$0xff] }
  0xc8   : > { %961 = vmatpush.bf16.msra.mxu0 %v2682_v14 }
  0xc9   : > { %1040 = vmatpush.bf16.msra.mxu1 %v2690_v15 }
  0xca   : > { %1118 = vmatpush.bf16.msra.mxu2 %v2699_v57 }
  0xcb   : > { %962 = vmatmul.bf16.vlgmr.msra.gmra.mxu0 %v905_v18 }
  0xcc   : > { %1041 = vmatmul.bf16.vlgmr.msra.gmra.mxu1 %v984_v19 }
  0xce   : > { %1119 = vmatpush.bf16.msra.mxu2 %v2698_v59 }
  0xd1   : > { %1120 = vmatmul.bf16.vlgmr.msra.gmra.mxu2 %v1063_v0 }
 0x148   : > { %v963_v24 = vpop.f32.mrf.mxu0 }
 0x149   : > { %v1042_v25 = vpop.f32.mrf.mxu1  ;;  %v1137_v27 = vmul.f32 %v1129_v22, %v963_v24  ;;  %v1138_v28 = vmul.f32 %v3974_v23, %v963_v24  ;;  %v1139_v36 = vmul.f32 %v3981_v34, %v963_v24  ;;  %v1140_v37 = vmul.f32 %v3983_v35, %v963_v24 }
 0x14a   : > { %v1143_v26 = vpack.c.bf16 %v1042_v25, %v1042_v25 }
 0x14b   : > { %v1141_v29 = vpack.c.bf16 %v1138_v28, %v1137_v27  ;;  %v1142_v38 = vpack.c.bf16 %v1140_v37, %v1139_v36 }
 0x14c   : > { %1151 = vmatpush.bf16.xpose.msra.mxu3 %v1143_v26 }
 0x150   : > { %v965_v30 = vpop.f32.mrf.mxu0 }
 0x151   : > { %v1044_v31 = vpop.f32.mrf.mxu1 }
 0x153   : > { %1152 = vmatmul.bf16.vlgmr.msra.gmra.mxu3 %v1141_v29 }
 0x154   : > { %v1121_v26 = vpop.f32.mrf.mxu2 }
 0x155   : > { %v1222_v27 = vpack.c.bf16 %v1121_v26, %v1121_v26 }
 0x157   : > { %v1231_v28 = vsel %vm1229_vm2, %v1222_v27, 0 }
 0x158   : > { %1240 = vmatpush.bf16.msrb.mxu3 %v1231_v28  ;;  %v2520_v28 = vld [vmem:[#allocation19 + $0xc0] sm:$0xf] }
 0x15c   : > { %v1123_v29 = vpop.f32.mrf.mxu2 }
 0x15d   : > { %v2740_v29 = vld [vmem:[#allocation19 + $0xcc] sm:$0xf0] }
 0x163   : > { %1157 = vmatmul.bf16.gmra.mxu3 %v1142_v38 }
 0x1d6   : > { %v1153_v42 = vpop.f32.mrf.mxu3 }
 0x1d7   : > { %v1167_v43 = vsel %vm1164_vm0, -1e+20, %v1153_v42 }
 0x1d8   : > { %v1171_v44 = vmul.f32 0.088388346, %v1167_v43 }
 0x1da   : > { %v1176_v46 = vsel %vm1175_vm1, %v1171_v44, -inf }
 0x1db   : > { %1177 = vmax.xlane.f32.xlu0 %v1176_v46  ;;  %v2713_v46 = vld [vmem:[#allocation13 + $0x38] sm:$0xff] }
 0x1dc   : > { %1328 = vmatpush.bf16.msrb.mxu0 %v2713_v46  ;;  %v2506_v46 = vld [vmem:[#allocation19 + $0xb0] sm:$0xf0] }
 0x1de   : > { %v1155_v48 = vpop.f32.mrf.mxu3 }
 0x1df   : > { %v1168_v49 = vsel %vm1164_vm0, -1e+20, %v1155_v48  ;;  %v2711_v48 = vld [vmem:[#allocation13 + $0x28] sm:$0xff] }
 0x1e0   : > { %v1172_v50 = vmul.f32 0.088388346, %v1168_v49  ;;  %1329 = vmatpush.bf16.msrb.mxu0 %v2712_v47  ;;  %v2710_v49 = vld [vmem:[#allocation13 + $0x20] sm:$0xff]  ;;  %v2512_v47 = vld [vmem:[#allocation19 + $0xa8] sm:$0xf] }
 0x1e2   : > { %v1179_v52 = vsel %vm1175_vm1, %v1172_v50, -inf }
 0x1e3   : > { %1180 = vmax.xlane.f32.xlu0 %v1179_v52  ;;  %v2707_v52 = vld [vmem:[#allocation13 + $0x8] sm:$0xff] }
 0x1e4   : > { %1330 = vmatpush.bf16.msrb.mxu0 %v2711_v48  ;;  %v2737_v48 = vld [vmem:[#allocation19 + $0xb4] sm:$0xf0] }
 0x1e6   : > { %v1158_v54 = vpop.f32.mrf.mxu3 }
 0x1e7   : > { %v1169_v55 = vsel %vm1164_vm0, -1e+20, %v1158_v54 }
 0x1e8   : > { %v1173_v56 = vmul.f32 0.088388346, %v1169_v55  ;;  %1331 = vmatpush.bf16.msrb.mxu0 %v2710_v49 }
 0x1ea   : > { %v1182_v58 = vsel %vm1175_vm1, %v1173_v56, -inf }
 0x1eb   : > { %1183 = vmax.xlane.f32.xlu1 %v1182_v58 }
 0x1ee   : > { %v1160_v61 = vpop.f32.mrf.mxu3 }
 0x1ef   : > { %v1170_v62 = vsel %vm1164_vm0, -1e+20, %v1160_v61 }
 0x1f0   : > { %v1174_v63 = vmul.f32 0.088388346, %v1170_v62 }
 0x1f2   : > { %v1185_v1 = vsel %vm1175_vm1, %v1174_v63, -inf }
 0x1f3   : > { %1186 = vmax.xlane.f32.xlu1 %v1185_v1 }
 0x24e   : > { %v1178_v2 = vpop.xlane.xlu0 %1177 }
 0x24f   : > { %v1188_v3 = vsub.f32 %v1171_v44, %v1178_v2  ;;  %v2970_v2 = vld [vmem:[#allocation14] ss:$0 sm:$0xff] }
 0x251   : > { %v1192_v4 = vmul.f32 1.442695, %v1188_v3 }
 0x253   : > { %2976 = vpow2.f32 %v1192_v4 }
 0x256   : > { %v1181_v5 = vpop.xlane.xlu0 %1180 }
 0x257   : > { %v1189_v6 = vsub.f32 %v1172_v50, %v1181_v5  ;;  %v2709_v50 = vld [vmem:[#allocation13 + $0x18] sm:$0xff] }
 0x258   : > { %1332 = vmatpush.bf16.msrb.mxu0 %v2709_v50  ;;  %v2513_v50 = vor.u32 %v2737_v48, %v2512_v47  ;;  %v2717_v47 = vld [vmem:[#allocation19 + $0x14] sm:$0xf0]  ;;  %v2715_v48 = vld [vmem:[#allocation19 + $0xc] sm:$0xf] }
 0x259   : > { %v2977_v7 = vpop.eup %2976  ;;  %v1194_v8 = vmul.f32 1.442695, %v1189_v6  ;;  %v3595_v6 = vmov 128.0  }
 0x25a   : > { %v1200_v9 = vsel %vm1175_vm1, %v2977_v7, 0.0 }
 0x25b   : > { %2978 = vpow2.f32 %v1194_v8  ;;  %1201 = vadd.xlane.f32.xlu2 %v1200_v9  ;;  %v2538_v8 = vld [vmem:[#allocation19 + $0xf0] sm:$0xf0]  ;;  %v2544_v9 = vld [vmem:[#allocation19 + $0xe8] sm:$0xf] }
 0x25c   : > { %1333 = vmatpush.bf16.msrb.mxu0 %v2708_v51  ;;  %v2735_v51 = vld [vmem:[#allocation19 + $0xac] sm:$0xf] }
 0x25e   : > { %v1184_v10 = vpop.xlane.xlu1 %1183 }
 0x25f   : > { %v1190_v11 = vsub.f32 %v1173_v56, %v1184_v10  ;;  %v2745_v10 = vld [vmem:[#allocation19 + $0xf4] sm:$0xf0] }
 0x260   : > { %1334 = vmatpush.bf16.msrb.mxu0 %v2707_v52  ;;  %v2514_v52 = vld [vmem:[#allocation19 + $0xb8] sm:$0xf0] }
 0x261   : > { %v2979_v12 = vpop.eup %2978  ;;  %v1196_v13 = vmul.f32 1.442695, %v1190_v11  ;;  %v2545_v11 = vor.u32 %v2745_v10, %v2544_v9  ;;  %v2456_v10 = vld [vmem:[#allocation19 + $0x40] sm:$0xf] }
 0x262   : > { %v1203_v14 = vsel %vm1175_vm1, %v2979_v12, 0.0 }
 0x263   : > { %2980 = vpow2.f32 %v1196_v13  ;;  %1204 = vadd.xlane.f32.xlu2 %v1203_v14  ;;  %v2546_v13 = vld [vmem:[#allocation19 + $0xf8] sm:$0xf0]  ;;  %1608 = vmatpush.bf16.msra.mxu3 %v2545_v11  ;;  %v2722_v11 = vld [vmem:[#allocation19 + $0x44] sm:$0xf] }
 0x264   : > { %1335 = vmatpush.bf16.msrb.mxu0 %v2706_v53  ;;  %v2517_v53 = vor.u32 %v2735_v51, %v2514_v52 }
 0x266   : > { %v1187_v15 = vpop.xlane.xlu1 %1186 }
 0x267   : > { %v1191_v17 = vsub.f32 %v1174_v63, %v1187_v15 }
 0x269   : > { %v2981_v18 = vpop.eup %2980  ;;  %v1198_v19 = vmul.f32 1.442695, %v1191_v17 }
 0x26a   : > { %v1206_v21 = vsel %vm1175_vm1, %v2981_v18, 0.0 }
 0x26b   : > { %2982 = vpow2.f32 %v1198_v19  ;;  %1207 = vadd.xlane.f32.xlu0 %v1206_v21 }
 0x271   : > { %v2983_v24 = vpop.eup %2982 }
 0x272   : > { %v1209_v25 = vsel %vm1175_vm1, %v2983_v24, 0.0 }
 0x273   : > { %1210 = vadd.xlane.f32.xlu1 %v1209_v25 }
 0x2ce   : > { %v1202_v30 = vpop.xlane.xlu2 %1201 }
 0x2cf   : > { %2984 = vrcp.f32 %v1202_v30  ;;  %v2738_v30 = vld [vmem:[#allocation19 + $0xc4] sm:$0xf] }
 0x2d5   : > { %v2985_v32 = vpop.eup %2984 }
 0x2d6   : > { %v1205_v31 = vpop.xlane.xlu2 %1204  ;;  %v1216_v36 = vmul.f32 %v2985_v32, %v2977_v7  ;;  %v2522_v32 = vld [vmem:[#allocation19 + $0xd0] sm:$0xf0] }
 0x2d7   : > { %2986 = vrcp.f32 %v1205_v31  ;;  %v2521_v31 = vor.u32 %v2740_v29, %v2520_v28  ;;  %v2718_v28 = vld [vmem:[#allocation19 + $0x24] sm:$0xf] }
 0x2dd   : > { %v2987_v33 = vpop.eup %2986 }
 0x2de   : > { %v1217_v37 = vmul.f32 %v2987_v33, %v2979_v12  ;;  %v1208_v39 = vpop.xlane.xlu0 %1207  ;;  %v2743_v12 = vld [vmem:[#allocation19 + $0xec] sm:$0xf]  ;;  %v2528_v33 = vld [vmem:[#allocation19 + $0xc8] sm:$0xf] }
 0x2df   : > { %2988 = vrcp.f32 %v1208_v39  ;;  %v2549_v14 = vor.u32 %v2743_v12, %v2546_v13  ;;  %v2739_v39 = vld [vmem:[#allocation19 + $0xcc] sm:$0xf]  ;;  %v2458_v13 = vld [vmem:[#allocation19 + $0x50] sm:$0xf0] }
 0x2e0   : > { %v1220_v38 = vpack.c.bf16 %v1217_v37, %v1216_v36  ;;  %v2741_v36 = vld [vmem:[#allocation19 + $0xd4] sm:$0xf0]  ;;  %v2525_v37 = vor.u32 %v2738_v30, %v2522_v32  ;;  %v2442_v30 = vld [vmem:[#allocation19 + $0x30] sm:$0xf0] }
 0x2e1   : > { %1621 = vmatpush.bf16.msra.mxu0 %v2549_v14  ;;  %v2464_v14 = vld [vmem:[#allocation19 + $0x48] sm:$0xf]  ;;  %v2721_v32 = vld [vmem:[#allocation19 + $0x34] sm:$0xf0] }
 0x2e2   : > { %2388 = vmatmul.msk.bf16.vlgmr.msrb.gmra.mxu3 %vm1175_vm1, %v1220_v38  ;;  %v2529_v38 = vor.u32 %v2741_v36, %v2528_v33  ;;  %v2445_v33 = vor.u32 %v2718_v28, %v2442_v30  ;;  %v2756_v28 = vld [vmem:[#allocation22 + $0x50] sm:$0xff]  ;;  %v2770_v30 = vld [vmem:[#allocation22 + $0xc0] sm:$0xff] }
 0x2e4   : > { %1609 = vmatpush.bf16.msra.mxu3 %v2529_v38  ;;  %v2450_v38 = vld [vmem:[#allocation19 + $0x38] sm:$0xf0] }
 0x2e5   : > { %v2989_v41 = vpop.eup %2988 }
 0x2e6   : > { %v1211_v40 = vpop.xlane.xlu1 %1210  ;;  %v1218_v43 = vmul.f32 %v2989_v41, %v2981_v18 }
 0x2e7   : > { %2990 = vrcp.f32 %v1211_v40  ;;  %v2530_v40 = vld [vmem:[#allocation19 + $0xd8] sm:$0xf0] }
 0x2e8   : > { %2992 = vrcp.f32 %v3595_v6  ;;  %v2533_v41 = vor.u32 %v2739_v39, %v2530_v40  ;;  %1610 = vmatpush.bf16.msra.mxu3 %v2513_v50  ;;  %v2480_v6 = vld [vmem:[#allocation19 + $0x68] sm:$0xf]  ;;  %v2424_v39 = vld [vmem:[#allocation19] sm:$0xf]  ;;  %v2434_v50 = vld [vmem:[#allocation19 + $0x18] sm:$0xf0] }
 0x2e9   : > { %v2437_v51 = vor.u32 %v2715_v48, %v2434_v50 }
 0x2ea   : > { %1622 = vmatpush.bf16.msra.mxu0 %v2533_v41  ;;  %v2716_v41 = vld [vmem:[#allocation19 + $0xc] sm:$0xf0] }
 0x2ed   : > { %v2991_v42 = vpop.eup %2990 }
 0x2ee   : > { %v1219_v44 = vmul.f32 %v2991_v42, %v2983_v24  ;;  %v2993_v15 = vpop.eup %2992  ;;  %v2504_v42 = vld [vmem:[#allocation19 + $0xa0] sm:$0xf]  ;;  %1623 = vmatpush.bf16.msra.mxu0 %v2517_v53 }
 0x2ef   : > { %vm1351_vm3 = vweird.f32 %v2993_v15  ;;  %v2753_v53 = vld [vmem:[#allocation22 + $0x38] sm:$0xff] }
 0x2f0   : > { %v1221_v45 = vpack.c.bf16 %v1219_v44, %v1218_v43  ;;  %v2736_v43 = vld [vmem:[#allocation19 + $0xac] sm:$0xf0]  ;;  %v2734_v44 = vld [vmem:[#allocation19 + $0xa4] sm:$0xf] }
 0x2f1   : > { %v2509_v49 = vor.u32 %v2734_v44, %v2506_v46  ;;  %v2425_v44 = vor.u32 %v2716_v41, %v2424_v39  ;;  %v2432_v46 = vld [vmem:[#allocation19 + $0x8] sm:$0xf] }
 0x2f2   : > { %2389 = vmatmul.msk.bf16.gmra.mxu3 %vm1175_vm1, %v1221_v45  ;;  %v2505_v45 = vor.u32 %v2736_v43, %v2504_v42  ;;  %v2714_v42 = vld [vmem:[#allocation19 + $0x4] sm:$0xf]  ;;  %v2426_v43 = vld [vmem:[#allocation19 + $0x10] sm:$0xf0] }
 0x365   : > { %v1242_v54 = vpop.f32.mrf.mxu3 }
 0x366   : > { %v1252_v58 = vmul.f32 %v1242_v54, %v1129_v22  ;;  %v2744_v22 = vld [vmem:[#allocation19 + $0xec] sm:$0xf0]  ;;  %v2488_v54 = vld [vmem:[#allocation19 + $0x80] sm:$0xf] }
 0x367   : > { %v2537_v7 = vor.u32 %v2744_v22, %v2536_v20  ;;  %v2729_v20 = vld [vmem:[#allocation19 + $0x74] sm:$0xf0] }
 0x369   : > { %1582 = vmatpush.bf16.msrb.mxu1 %v2537_v7  ;;  %v2727_v7 = vld [vmem:[#allocation19 + $0x6c] sm:$0xf] }
 0x36d   : > { %v1244_v55 = vpop.f32.mrf.mxu3  ;;  %1583 = vmatpush.bf16.msrb.mxu1 %v2521_v31  ;;  %v2448_v31 = vld [vmem:[#allocation19 + $0x28] sm:$0xf] }
 0x36e   : > { %v1253_v57 = vmul.f32 %v1244_v55, %v3974_v23  ;;  %v2732_v55 = vld [vmem:[#allocation19 + $0x8c] sm:$0xf0]  ;;  %v2449_v36 = vor.u32 %v2721_v32, %v2448_v31 }
 0x36f   : > { %v2755_v31 = vld [vmem:[#allocation22 + $0x48] sm:$0xff] }
 0x370   : > { %v1256_v60 = vadd.f32 %v1253_v57, %v1252_v58  ;;  %v2489_v57 = vor.u32 %v2732_v55, %v2488_v54  ;;  %v2490_v58 = vld [vmem:[#allocation19 + $0x90] sm:$0xf0]  ;;  %v2777_v54 = vld [vmem:[#allocation22 + $0xf8] sm:$0xff]  ;;  %v2763_v32 = vld [vmem:[#allocation22 + $0x88] sm:$0xff] }
 0x371   : > { %1584 = vmatpush.bf16.msrb.mxu1 %v2505_v45  ;;  %v2429_v45 = vor.u32 %v2714_v42, %v2426_v43 }
 0x375   : > { %v1247_v56 = vpop.f32.mrf.mxu3  ;;  %1585 = vmatpush.bf16.msrb.mxu1 %v2489_v57  ;;  %v2769_v57 = vld [vmem:[#allocation22 + $0xb8] sm:$0xff] }
 0x376   : > { %v1254_v59 = vmul.f32 %v1247_v56, %v3981_v34  ;;  %v2742_v34 = vld [vmem:[#allocation19 + $0xe4] sm:$0xf] }
 0x377   : > { %v2730_v56 = vld [vmem:[#allocation19 + $0x84] sm:$0xf] }
 0x378   : > { %v1257_v62 = vadd.f32 %v1256_v60, %v1254_v59  ;;  %v2496_v59 = vld [vmem:[#allocation19 + $0x88] sm:$0xf]  ;;  %v2733_v60 = vld [vmem:[#allocation19 + $0x94] sm:$0xf0] }
 0x37d   : > { %v1249_v61 = vpop.f32.mrf.mxu3 }
 0x37e   : > { %v1255_v63 = vmul.f32 %v1249_v61, %v3983_v35  ;;  %v2541_v35 = vor.u32 %v2742_v34, %v2538_v8  ;;  %v2493_v61 = vor.u32 %v2730_v56, %v2490_v58  ;;  %v2481_v34 = vor.u32 %v2729_v20, %v2480_v6  ;;  %v2482_v8 = vld [vmem:[#allocation19 + $0x78] sm:$0xf0]  ;;  %v2752_v58 = vld [vmem:[#allocation22 + $0x30] sm:$0xff]  ;;  %v2766_v6 = vld [vmem:[#allocation22 + $0xa0] sm:$0xff] }
 0x37f   : > { %v2485_v9 = vor.u32 %v2727_v7, %v2482_v8  ;;  %v2761_v56 = vld [vmem:[#allocation22 + $0x78] sm:$0xff] }
 0x380   : > { %v1258_v0 = vadd.f32 %v1257_v62, %v1255_v63  ;;  %1595 = vmatpush.bf16.msrb.mxu2 %v2541_v35  ;;  %v2497_v62 = vor.u32 %v2733_v60, %v2496_v59  ;;  %v2731_v63 = vld [vmem:[#allocation19 + $0x8c] sm:$0xf]  ;;  %v2724_v35 = vld [vmem:[#allocation19 + $0x4c] sm:$0xf0]  ;;  %v2776_v59 = vld [vmem:[#allocation22 + $0xf0] sm:$0xff] }
 0x381   : > { %v2457_v12 = vor.u32 %v2724_v35, %v2456_v10  ;;  %v2773_v7 = vld [vmem:[#allocation22 + $0xd8] sm:$0xff] }
 0x382   : > { %v1275_v1 = vpack.c.bf16 %v1258_v0, %v1258_v0  ;;  %v2498_v0 = vld [vmem:[#allocation19 + $0x98] sm:$0xf0]  ;;  %1611 = vmatpush.bf16.msra.mxu3 %v2497_v62  ;;  %v2768_v62 = vld [vmem:[#allocation22 + $0xb0] sm:$0xff] }
 0x383   : > { %v2757_v8 = vld [vmem:[#allocation22 + $0x58] sm:$0xff] }
 0x384   : > { %1336 = vmatmul.bf16.vlgmr.msrb.gmra.mxu0 %v1275_v1  ;;  %1596 = vmatpush.bf16.msrb.mxu2 %v2525_v37  ;;  %v2501_v1 = vor.u32 %v2731_v63, %v2498_v0  ;;  %v2719_v37 = vld [vmem:[#allocation19 + $0x2c] sm:$0xf] }
 0x385   : > { %v2453_v40 = vor.u32 %v2719_v37, %v2450_v38  ;;  %v2751_v63 = vld [vmem:[#allocation22 + $0x28] sm:$0xff]  ;;  %v1412_v37 = vld [vmem:[#allocation20] sm:$0xf] }
 0x386   : > { %1624 = vmatpush.bf16.msra.mxu0 %v2501_v1  ;;  %1612 = vmatpush.bf16.msra.mxu3 %v2481_v34  ;;  %v2775_v0 = vld [vmem:[#allocation22 + $0xe8] sm:$0xff]  ;;  %v2749_v34 = vld [vmem:[#allocation22 + $0x18] sm:$0xff]  ;;  %v1414_v38 = vperm.slane %v1412_v37, 0  ;;  %v1417_v39 = vperm.slane %v1412_v37, 3 }
 0x387   : > { %v2759_v1 = vld [vmem:[#allocation22 + $0x68] sm:$0xff] }
 0x388   : > { %1597 = vmatpush.bf16.msrb.mxu2 %v2509_v49  ;;  %v2433_v49 = vor.u32 %v2717_v47, %v2432_v46  ;;  %v1416_v47 = vperm.slane %v1412_v37, 2 }
 0x38a   : > { %1625 = vmatpush.bf16.msra.mxu0 %v2485_v9  ;;  %v2765_v9 = vld [vmem:[#allocation22 + $0x98] sm:$0xff] }
 0x38c   : > { %1598 = vmatpush.bf16.msrb.mxu2 %v2493_v61  ;;  %v2760_v61 = vld [vmem:[#allocation22 + $0x70] sm:$0xff] }
 0x401   : > { %v1337_v3 = vpop.f32.mrf.mxu0 }
 0x402   : > { %v1338_v4 = vadd.f32 %v2970_v2, %v1337_v3  ;;  %v2472_v2 = vld [vmem:[#allocation19 + $0x60] sm:$0xf]  ;;  %v2728_v3 = vld [vmem:[#allocation19 + $0x6c] sm:$0xf0] }
 0x404   : > { %v1341_v5 = vadd.f32 %v1338_v4, %v3961_v16  ;;  %v1347_v16 = vmul.f32 128.0, %v2993_v15  ;;  %v2726_v4 = vld [vmem:[#allocation19 + $0x64] sm:$0xf] }
 0x406   : > { %1344 = vadd.xlane.f32.xlu2 %v1341_v5  ;;  %v1348_v17 = vsub.f32 1.0, %v1347_v16  ;;  %v2461_v16 = vor.u32 %v2722_v11, %v2458_v13  ;;  %v2748_v11 = vld [vmem:[#allocation22 + $0x10] sm:$0xff] }
 0x408   : > { %v1349_v18 = vmul.f32 %v2993_v15, %v1348_v17 }
 0x409   : > { %v1339_v23 = vpop.f32.mrf.mxu0 }
 0x40a   : > { %v1350_v19 = vadd.f32 %v2993_v15, %v1349_v18  ;;  %v2474_v23 = vld [vmem:[#allocation19 + $0x70] sm:$0xf0]  ;;  %v2723_v18 = vld [vmem:[#allocation19 + $0x4c] sm:$0xf] }
 0x40b   : > { %v2477_v22 = vor.u32 %v2726_v4, %v2474_v23  ;;  %v2774_v4 = vld [vmem:[#allocation22 + $0xe0] sm:$0xff] }
 0x40c   : > { %v4014_v21 = vsel %vm1351_vm3, %v2993_v15, %v1350_v19  ;;  %v2725_v15 = vld [vmem:[#allocation19 + $0x54] sm:$0xf0]  ;;  %v2466_v19 = vld [vmem:[#allocation19 + $0x58] sm:$0xf0]  ;;  %v2758_v23 = vld [vmem:[#allocation22 + $0x60] sm:$0xff] }
 0x40d   : > { %1599 = vmatpush.bf16.msrb.mxu2 %v2477_v22  ;;  %v2465_v17 = vor.u32 %v2725_v15, %v2464_v14  ;;  %v2971_v14 = vld [vmem:[#allocation16] ss:$0 sm:$0xff] }
 0x40f   : > { %1613 = vmatpush.bf16.msra.mxu3 %v2465_v17  ;;  %v2972_v17 = vld [vmem:[#allocation17] ss:$0 sm:$0xff] }
 0x411   : > { %1600 = vmatpush.bf16.msrb.mxu2 %v2461_v16 }
 0x413   : > { %1614 = vmatpush.bf16.msra.mxu3 %v2449_v36  ;;  %v2762_v36 = vld [vmem:[#allocation22 + $0x80] sm:$0xff] }
 0x415   : > { %1601 = vmatpush.bf16.msrb.mxu2 %v2445_v33  ;;  %v2754_v33 = vld [vmem:[#allocation22 + $0x40] sm:$0xff] }
 0x417   : > { %1615 = vmatpush.bf16.msra.mxu3 %v2433_v49 }
 0x419   : > { %1602 = vmatpush.bf16.msrb.mxu2 %v2429_v45  ;;  %v1415_v45 = vperm.slane %v1412_v37, 1 }
 0x41b   : > { %1928 = vmatpush.bf16.msrb.mxu3 %v2769_v57 }
 0x41d   : > { %1915 = vmatpush.bf16.msra.mxu2 %v2761_v56 }
 0x41f   : > { %1929 = vmatpush.bf16.msrb.mxu3 %v2768_v62 }
 0x421   : > { %1916 = vmatpush.bf16.msra.mxu2 %v2760_v61 }
 0x425   : > { %1917 = vmatpush.bf16.msra.mxu2 %v2759_v1 }
 0x429   : > { %1918 = vmatpush.bf16.msra.mxu2 %v2758_v23 }
 0x42d   : > { %1919 = vmatpush.bf16.msra.mxu2 %v2757_v8 }
 0x431   : > { %1920 = vmatpush.bf16.msra.mxu2 %v2756_v28 }
 0x435   : > { %1921 = vmatpush.bf16.msra.mxu2 %v2755_v31 }
 0x439   : > { %1922 = vmatpush.bf16.msra.mxu2 %v2754_v33 }
 0x479   : > { %v1345_v24 = vpop.xlane.xlu2 %1344 }
 0x47a   : > { %v1353_v25 = vmul.f32 %v4014_v21, %v1345_v24  ;;  %v2469_v24 = vor.u32 %v2723_v18, %v2466_v19 }
 0x47c   : > { %v4017_v26 = vsub.f32 %v1341_v5, %v1353_v25  ;;  %v2473_v5 = vor.u32 %v2728_v3, %v2472_v2  ;;  %v2440_v25 = vld [vmem:[#allocation19 + $0x20] sm:$0xf]  ;;  %1626 = vmatpush.bf16.msra.mxu0 %v2469_v24  ;;  %v2767_v2 = vld [vmem:[#allocation22 + $0xa8] sm:$0xff]  ;;  %v2750_v3 = vld [vmem:[#allocation22 + $0x20] sm:$0xff] }
 0x47d   : > { %1930 = vmatpush.bf16.msrb.mxu3 %v2767_v2 }
 0x47e   : > { %v1355_v27 = vmul.f32 %v4017_v26, %v4017_v26  ;;  %1586 = vmatpush.bf16.msrb.mxu1 %v2473_v5 }
 0x480   : > { %1356 = vadd.xlane.f32.xlu0 %v1355_v27  ;;  %v2720_v27 = vld [vmem:[#allocation19 + $0x2c] sm:$0xf0]  ;;  %1627 = vmatpush.bf16.msra.mxu0 %v2453_v40 }
 0x481   : > { %v2441_v29 = vor.u32 %v2720_v27, %v2440_v25  ;;  %1931 = vmatpush.bf16.msrb.mxu3 %v2766_v6  ;;  %v2747_v25 = vld [vmem:[#allocation22 + $0x8] sm:$0xff] }
 0x482   : > { %1587 = vmatpush.bf16.msrb.mxu1 %v2457_v12  ;;  %v2772_v12 = vld [vmem:[#allocation22 + $0xd0] sm:$0xff]  ;;  %v2771_v27 = vld [vmem:[#allocation22 + $0xc8] sm:$0xff] }
 0x484   : > { %1628 = vmatpush.bf16.msra.mxu0 %v2437_v51 }
 0x485   : > { %1932 = vmatpush.bf16.msrb.mxu3 %v2765_v9 }
 0x486   : > { %1588 = vmatpush.bf16.msrb.mxu1 %v2441_v29  ;;  %v2764_v29 = vld [vmem:[#allocation22 + $0x90] sm:$0xff] }
 0x488   : > { %1941 = vmatpush.bf16.msrb.mxu0 %v2777_v54 }
 0x489   : > { %1933 = vmatpush.bf16.msrb.mxu3 %v2764_v29 }
 0x48a   : > { %1589 = vmatpush.bf16.msrb.mxu1 %v2425_v44 }
 0x48c   : > { %1942 = vmatpush.bf16.msrb.mxu0 %v2776_v59 }
 0x48d   : > { %1934 = vmatpush.bf16.msrb.mxu3 %v2763_v32 }
 0x48e   : > { %1902 = vmatpush.bf16.msra.mxu1 %v2753_v53 }
 0x490   : > { %1943 = vmatpush.bf16.msrb.mxu0 %v2775_v0  ;;  %v2973_v0 = vld [vmem:[#allocation23] ss:$0 sm:$0xff] }
 0x491   : > { %1935 = vmatpush.bf16.msrb.mxu3 %v2762_v36 }
 0x492   : > { %1903 = vmatpush.bf16.msra.mxu1 %v2752_v58 }
 0x494   : > { %1944 = vmatpush.bf16.msrb.mxu0 %v2774_v4 }
 0x496   : > { %1904 = vmatpush.bf16.msra.mxu1 %v2751_v63 }
 0x498   : > { %1945 = vmatpush.bf16.msrb.mxu0 %v2773_v7 }
 0x49a   : > { %1905 = vmatpush.bf16.msra.mxu1 %v2750_v3 }
 0x49c   : > { %1946 = vmatpush.bf16.msrb.mxu0 %v2772_v12 }
 0x49e   : > { %1906 = vmatpush.bf16.msra.mxu1 %v2749_v34 }
 0x4a0   : > { %1947 = vmatpush.bf16.msrb.mxu0 %v2771_v27  ;;  %v2975_v27 = vld [vmem:[#allocation26] ss:$0 sm:$0xff] }
 0x4a2   : > { %1907 = vmatpush.bf16.msra.mxu1 %v2748_v11 }
 0x4a4   : > { %1948 = vmatpush.bf16.msrb.mxu0 %v2770_v30 }
 0x4a6   : > { %1908 = vmatpush.bf16.msra.mxu1 %v2747_v25 }
 0x4f3   : > { %v1357_v52 = vpop.xlane.xlu0 %1356 }
 0x4f4   : > { %v1358_v55 = vmul.f32 %v1357_v52, %v4014_v21 }
 0x4f6   : > { %v1359_v60 = vadd.f32 1e-05, %v1358_v55 }
 0x4f8   : > { %2994 = vrsqrt.f32 %v1359_v60  ;;  %vm1366_vm5 = vweird.f32 %v1359_v60 }
 0x4fe   : > { %v2995_v5 = vpop.eup %2994 }
 0x4ff   : > { %v1361_v20 = vmul.f32 %v2995_v5, %v1359_v60  ;;  %vm1367_vm4 = vweird.f32 %v2995_v5 }
 0x500   : > { %vm1368_vm6 = vmor %vm1366_vm5, %vm1367_vm4 }
 0x501   : > { %v1362_v22 = vmul.f32 %v2995_v5, %v1361_v20 }
 0x503   : > { %v1363_v10 = vmul.f32 0.5, %v1362_v22 }
 0x505   : > { %v1364_v35 = vsub.f32 1.5, %v1363_v10 }
 0x507   : > { %v1365_v13 = vmul.f32 %v2995_v5, %v1364_v35 }
 0x509   : > { %v1369_v15 = vsel %vm1368_vm6, %v2995_v5, %v1365_v13 }
 0x50a   : > { %v1370_v16 = vmul.f32 %v1369_v15, %v4017_v26  ;;  %v2746_v26 = vld [vmem:[#allocation22] sm:$0xff] }
 0x50b   : > { %1909 = vmatpush.bf16.msra.mxu1 %v2746_v26 }
 0x50c   : > { %v1374_v18 = vmul.f32 %v2971_v14, %v1370_v16 }
 0x50e   : > { %v4023_v19 = vadd.f32 %v2972_v17, %v1374_v18 }
 0x510   : > { %v1411_v24 = vpack.c.bf16 %v4023_v19, %v4023_v19 }
 0x512   : > { %1590 = vmatmul.bf16.vlgmr.msrb.gmra.mxu1 %v1411_v24  ;;  %1603 = vmatmul.bf16.vlgmr.msrb.gmra.mxu2 %v1411_v24 }
 0x513   : > { %1616 = vmatmul.bf16.vlgmr.msra.gmra.mxu3 %v1411_v24  ;;  %1629 = vmatmul.bf16.vlgmr.msra.gmra.mxu0 %v1411_v24  ;;  %v2974_v24 = vld [vmem:[#allocation25] ss:$0 sm:$0xff] }
 0x58f   : > { %v1591_v40 = vpop.f32.mrf.mxu1 }
 0x590   : > { %v1592_v41 = vadd.f32 %v1591_v40, %v1414_v38  ;;  %v1630_v42 = vpop.f32.mrf.mxu0 }
 0x591   : > { %v1631_v43 = vadd.f32 %v1630_v42, %v1417_v39 }
 0x592   : > { %v1634_v44 = vmax.f32 %v1592_v41, 0.0 }
 0x593   : > { %v1637_v46 = vmax.f32 %v1631_v43, 0.0 }
 0x594   : > { %v1702_v48 = vpack.c.bf16 %v1634_v44, %v1634_v44 }
 0x595   : > { %v1705_v49 = vpack.c.bf16 %v1637_v46, %v1637_v46  ;;  %v1604_v50 = vpop.f32.mrf.mxu2 }
 0x596   : > { %v1605_v51 = vadd.f32 %v1604_v50, %v1415_v45  ;;  %v1617_v52 = vpop.f32.mrf.mxu3  ;;  %1910 = vmatmul.bf16.vlgmr.msra.gmra.mxu1 %v1702_v48 }
 0x597   : > { %v1618_v53 = vadd.f32 %v1617_v52, %v1416_v47  ;;  %1949 = vmatmul.bf16.vlgmr.msrb.gmra.mxu0 %v1705_v49  ;;  %v1593_v54 = vpop.f32.mrf.mxu1 }
 0x598   : > { %v1635_v55 = vmax.f32 %v1605_v51, 0.0  ;;  %v1632_v56 = vpop.f32.mrf.mxu0 }
 0x599   : > { %v1636_v57 = vmax.f32 %v1618_v53, 0.0 }
 0x59a   : > { %v1703_v58 = vpack.c.bf16 %v1635_v55, %v1635_v55 }
 0x59b   : > { %v1704_v59 = vpack.c.bf16 %v1636_v57, %v1636_v57 }
 0x59c   : > { %1923 = vmatmul.bf16.vlgmr.msra.gmra.mxu2 %v1703_v58 }
 0x59d   : > { %1936 = vmatmul.bf16.vlgmr.msrb.gmra.mxu3 %v1704_v59  ;;  %v1606_v60 = vpop.f32.mrf.mxu2 }
 0x59e   : > { %v1619_v61 = vpop.f32.mrf.mxu3 }
 0x613   : > { %v1911_v62 = vpop.f32.mrf.mxu1 }
 0x614   : > { %v1950_v63 = vpop.f32.mrf.mxu0  ;;  %v1912_v3 = vadd.f32 %v2973_v0, %v1911_v62 }
 0x61b   : > { %v1913_v1 = vpop.f32.mrf.mxu1 }
 0x61c   : > { %v1952_v2 = vpop.f32.mrf.mxu0 }
 0x61f   : > { %v1924_v4 = vpop.f32.mrf.mxu2 }
 0x620   : > { %v1925_v5 = vadd.f32 %v1924_v4, %v1912_v3  ;;  %v1937_v23 = vpop.f32.mrf.mxu3 }
 0x622   : > { %v1938_v6 = vadd.f32 %v1937_v23, %v1925_v5 }
 0x624   : > { %v1951_v20 = vadd.f32 %v1950_v63, %v1938_v6 }
 0x626   : > { %v1954_v22 = vadd.f32 %v1951_v20, %v4023_v19 }
 0x627   : > { %v1926_v34 = vpop.f32.mrf.mxu2 }
 0x628   : > { %v1939_v7 = vpop.f32.mrf.mxu3  ;;  %1957 = vadd.xlane.f32.xlu1 %v1954_v22 }
 0x69b   : > { %v1958_v8 = vpop.xlane.xlu1 %1957 }
 0x69c   : > { %v1959_v9 = vmul.f32 %v1958_v8, %v4014_v21 }
 0x69e   : > { %v1960_v10 = vsub.f32 %v1954_v22, %v1959_v9 }
 0x6a0   : > { %v1961_v35 = vmul.f32 %v1960_v10, %v1960_v10 }
 0x6a2   : > { %1962 = vadd.xlane.f32.xlu2 %v1961_v35 }
 0x715   : > { %v1963_v11 = vpop.xlane.xlu2 %1962 }
 0x716   : > { %v1964_v12 = vmul.f32 %v1963_v11, %v4014_v21 }
 0x718   : > { %v1965_v13 = vadd.f32 1e-05, %v1964_v12 }
 0x71a   : > { %2996 = vrsqrt.f32 %v1965_v13  ;;  %vm1972_vm8 = vweird.f32 %v1965_v13 }
 0x720   : > { %v2997_v14 = vpop.eup %2996 }
 0x721   : > { %v1967_v15 = vmul.f32 %v2997_v14, %v1965_v13  ;;  %vm1973_vm7 = vweird.f32 %v2997_v14 }
 0x722   : > { %vm1974_vm9 = vmor %vm1972_vm8, %vm1973_vm7 }
 0x723   : > { %v1968_v16 = vmul.f32 %v2997_v14, %v1967_v15 }
 0x725   : > { %v1969_v17 = vmul.f32 0.5, %v1968_v16 }
 0x727   : > { %v1970_v18 = vsub.f32 1.5, %v1969_v17 }
 0x729   : > { %v1971_v19 = vmul.f32 %v2997_v14, %v1970_v18 }
 0x72b   : > { %v1975_v21 = vsel %vm1974_vm9, %v2997_v14, %v1971_v19 }
 0x72c   : > { %v1976_v25 = vmul.f32 %v1975_v21, %v1960_v10 }
 0x72e   : > { %v1980_v28 = vmul.f32 %v2974_v24, %v1976_v25 }
 0x730   : > { %v1984_v29 = vadd.f32 %v2975_v27, %v1980_v28 }
 0x732   : > { %1985 = vst [vmem:[%s881_s23] sm:$0xff] %v1984_v29 }
 0x733   : > { %3505 = shalt.err (!%p3502_p6)
}
 0x734   : > { %2836 = dma.vmem_to_hbm [thread:$0]  (%p3790_p4), %s2000_s8, 128, %s2002_s18, %s1987_s20  }
 0x735 PF: > { %s4155_s6 = sld [smem:[#allocation39_spill]] }
 0x736   : > { %s4157_s7 = sld [smem:[#allocation40_spill]] }
 0x73b   : > { %s2013_s26 = sand.u32 1, %s4155_s6  }
 0x73c   : > { %p4158_p11 = scmp.ge.s32.totalorder %s4157_s7, 2  ;;  %s2014_s13 = scalar_lea.sflag [#allocation4], %s2013_s26 }
 0x73e   : > { %p2889_p13 = pnand %p4158_p11, %p3794_p5 }
 0x740   : > { %p2890_p3 = pneg %p2889_p13 }
 0x742   : > { %3559 = dma.done.wait (%p2890_p3), %s2014_s13, 128  }
 0x743   : > { %3561 = vsyncadd (%p2890_p3), %s2014_s13, 4294967168  ;;  %s4159_s30 = sld [smem:[#allocation42_spill]]  ;;  %s4161_s27 = smov %s3568_s28 }
 0x744   : > { %s4160_s9 = sld [smem:[#allocation43_spill]]  ;;  %s4162_s28 = smov %s3572_s29 }
 0x749   : > { %p41_p7 = scmp.ge.s32.totalorder %s4159_s30, 4  }
 0x74a   : > { %s4163_s29 = smov %s4160_s9 }
 0x74b   :  { %43 = sbr.rel (!%p41_p7) target bundleno = 28 (0x1c), region = 216 }
 0x750   :  { %2020 = vsyncpa [#allocation3], 1 }
 0x751   :  { %2022 = vsyncpa [#allocation3 + $0x1], 1 }
 0x752   :  { %2023 = vsyncpa [#allocation6], 1 }
 0x753   :  { %2025 = vsyncpa [#allocation6 + $0x1], 1 }
 0x754   :  { %2026 = vsyncpa [#allocation9], 1 }
 0x755   :  { %2027 = vsyncpa [#allocation12], 1 }
 0x756   :  { %2028 = vsyncpa [#allocation15], 1 }
 0x757   :  { %2029 = vsyncpa [#allocation18], 1 }
 0x758   :  { %2030 = vsyncpa [#allocation21], 1 }
 0x759   :  { %2031 = vsyncpa [#allocation24], 1 }
 0x75a   :  { %2032 = vsyncpa [#allocation27], 1 }
 0x75b   :  { %2033 = vsyncpa [#allocation4], 1 }
 0x75c   :  { %2035 = vsyncpa [#allocation4 + $0x1], 1 }

</bundles_post_ra>
